<compile_context>
chip_gen: v5e
topology: v5e:2x2
jax: 0.10.0
libtpu: 0.0.40
codegen_flags: <defaults>
</compile_context>

<pallas_src>
import functools

import jax
import jax.numpy as jnp
from jax.experimental import pallas as pl
from jax.experimental.pallas import tpu as pltpu


def _gelu_erf(z):
    # Exact (erf) GELU matching torch.nn.functional.gelu default (approximate='none').
    # erf via Abramowitz & Stegun 7.1.26 (|err| < 1.5e-7): exp + polynomial only; the
    # divide is routed to the EUP slot with pl.reciprocal.
    u = z * 0.7071067811865476
    au = jnp.abs(u)
    t = pl.reciprocal(1.0 + 0.3275911 * au, approx=True)
    poly = t * (0.254829592 + t * (-0.284496736 + t * (1.421413741 +
                t * (-1.453152027 + t * 1.061405429))))
    erf_abs = 1.0 - poly * jnp.exp(-au * au)
    erf_u = jnp.where(u >= 0.0, erf_abs, -erf_abs)
    return 0.5 * z * (1.0 + erf_u)


# ----------------------------- Pallas kernel --------------------------------
def block_kernel(xt_ref, k1_ref, v1_ref, k2_ref, v2_ref, vecs_ref,
                 wq1_ref, wo1_ref, wq2_ref, wo2_ref,
                 wf1_ref, bf1_ref, wf2_ref,
                 out_ref, *, heads, d_head, scale, kv_chunk_self, kv_chunk_cross):
    f32, bf16 = jnp.float32, jnp.bfloat16

    xt = xt_ref[0]                       # (tq, D) f32 residual / query tile
    vecs = vecs_ref[...]                 # (9, D)  packed layernorm scales/biases + biases
    n1w, n1b = vecs[0:1], vecs[1:2]
    n2w, n2b = vecs[2:3], vecs[3:4]
    n3w, n3b = vecs[4:5], vecs[5:6]
    bo1, bo2, bf2b = vecs[6:7], vecs[7:8], vecs[8:9]

    def layernorm(h, w, b):
        mu = jnp.mean(h, axis=-1, keepdims=True)
        var = jnp.mean(jnp.square(h - mu), axis=-1, keepdims=True)
        return (h - mu) * jax.lax.rsqrt(var + 1e-5) * w + b

    def attention(x_ln, wq_ref, k_ref, v_ref, wo_ref, bo, kv_chunk):
        # x_ln: (nq, D) f32 queries; k_ref/v_ref: (1, H, S, dh) bf16 (precomputed on host).
        nq = x_ln.shape[0]
        # Full-width Q projection (contraction D, output H*dh): MXU-friendly.
        q = jnp.dot(x_ln.astype(bf16), wq_ref[...],
                    preferred_element_type=f32) * scale              # (nq, H*dh) f32
        # Head split via lane slices of the small activation tile.
        qh = jnp.stack(
            [q[:, h * d_head:(h + 1) * d_head] for h in range(heads)],
            axis=0).astype(bf16)                                     # (H, nq, dh)

        s_len = k_ref.shape[2]
        n_chunks = s_len // kv_chunk
        # Online softmax over K/V chunks: the (H, nq, S) f32 score block never materializes.
        m = jnp.full((heads, nq, 1), -jnp.inf, f32)
        l = jnp.zeros((heads, nq, 1), f32)
        acc = jnp.zeros((heads, nq, d_head), f32)
        for c in range(n_chunks):
            kc = k_ref[0, :, c * kv_chunk:(c + 1) * kv_chunk, :]     # (H, tk, dh) bf16
            vc = v_ref[0, :, c * kv_chunk:(c + 1) * kv_chunk, :]
            s = jnp.einsum('hqd,hkd->hqk', qh, kc, preferred_element_type=f32)
            m_new = jnp.maximum(m, jnp.max(s, axis=-1, keepdims=True))
            alpha = jnp.exp(m - m_new)
            p = jnp.exp(s - m_new)
            l = alpha * l + jnp.sum(p, axis=-1, keepdims=True)
            acc = alpha * acc + jnp.einsum('hqk,hkd->hqd', p.astype(bf16), vc,
                                           preferred_element_type=f32)
            m = m_new

        o = acc * pl.reciprocal(l, approx=True)                      # (H, nq, dh) f32
        # Head merge (lane concat), then ONE full-width output projection (H*dh x D).
        o_flat = jnp.concatenate([o[h] for h in range(heads)],
                                 axis=-1).astype(bf16)               # (nq, H*dh)
        return jnp.dot(o_flat, wo_ref[...], preferred_element_type=f32) + bo

    # ---- attn1: self-attention (Q from the tile, K/V hoisted per batch) ----
    xt = xt + attention(layernorm(xt, n1w, n1b), wq1_ref, k1_ref, v1_ref,
                        wo1_ref, bo1, kv_chunk_self)
    # ---- attn2: cross-attention (Q from the tile, K/V from context, hoisted) ----
    xt = xt + attention(layernorm(xt, n2w, n2b), wq2_ref, k2_ref, v2_ref,
                        wo2_ref, bo2, kv_chunk_cross)

    # ---- GEGLU feed-forward ----
    h3 = layernorm(xt, n3w, n3b)
    proj = jnp.dot(h3.astype(bf16), wf1_ref[...],
                   preferred_element_type=f32) + bf1_ref[...]        # (tq, 2F)
    f_inner = wf2_ref.shape[0]
    ff = proj[:, :f_inner] * _gelu_erf(proj[:, f_inner:])
    xt = xt + jnp.dot(ff.astype(bf16), wf2_ref[...],
                      preferred_element_type=f32) + bf2b

    out_ref[0] = xt.astype(out_ref.dtype)


# ------------------------------ wrapper --------------------------------------
def _vmem_capacity_bytes():
    try:
        return int(pltpu.get_tpu_info().vmem_capacity_bytes)
    except Exception:
        return 64 * 1024 * 1024          # conservative (v7x-sized) fallback


def _pick_tile(n, target):
    """Largest t <= target with n % t == 0 and (t % 8 == 0 or t == n)."""
    if n <= target:
        return n
    for t in range(target, 7, -1):
        if n % t == 0 and t % 8 == 0:
            return t
    return n


def basic_transformer_block(x, context, params, *, heads, d_head, tq=None):
    B, N, D = x.shape
    _, M, _ = context.shape
    inner = heads * d_head

    (n1w, n1b, wq1, wk1, wv1, wo1, bo1,
     n2w, n2b, wq2, wk2, wv2, wo2, bo2,
     n3w, n3b, wf1, bf1, wf2, bf2) = params
    assert wq1.shape == (D, inner) and wo1.shape == (inner, D)

    bf16 = jnp.bfloat16
    vmem_cap = _vmem_capacity_bytes()
    # Generation-aware scoped VMEM: ~96 MiB on 128-MiB chips (v5e/v6e), ~40 MiB on v7x.
    vmem_limit = max(min(vmem_cap - 24 * 1024 * 1024, vmem_cap * 3 // 4),
                     32 * 1024 * 1024)

    if tq is None:
        tq = _pick_tile(N, 512 if vmem_cap >= 96 * 1024 * 1024 else 256)
    assert N % tq == 0 and (tq % 8 == 0 or tq == N), "bad query tile"
    # v7x has 2 TensorCores sharing the grid: keep >=2 parallel grid steps when possible.
    if B * (N // tq) < 2 and tq % 16 == 0:
        tq //= 2
    n_qt = N // tq

    # Static K/V chunk sizes for the in-kernel online-softmax loop.
    kv_self = _pick_tile(N, 512)
    kv_cross = _pick_tile(M, 512)

    def layernorm_host(h, w, b):
        mu = jnp.mean(h, axis=-1, keepdims=True)
        var = jnp.mean(jnp.square(h - mu), axis=-1, keepdims=True)
        return (h - mu) * jax.lax.rsqrt(var + 1e-5) * w + b

    def split_heads(t):                  # (B, S, H*dh) -> (B, H, S, dh) bf16
        return t.reshape(t.shape[0], t.shape[1], heads, d_head) \
                .transpose(0, 2, 1, 3).astype(bf16)

    # Hoisted K/V precompute (once per batch element, not once per query tile).
    ln1x = layernorm_host(x, n1w, n1b)
    k1 = split_heads(ln1x @ wk1)
    v1 = split_heads(ln1x @ wv1)
    k2 = split_heads(context @ wk2)
    v2 = split_heads(context @ wv2)

    # Consolidate the nine (1, D) vectors into one (9, D) array -> single DMA / tile.
    vecs = jnp.concatenate(
        [n1w, n1b, n2w, n2b, n3w, n3b, bo1, bo2, bf2], axis=0).astype(jnp.float32)

    weights = [wq1.astype(bf16), wo1.astype(bf16),
               wq2.astype(bf16), wo2.astype(bf16),
               wf1.astype(bf16), bf1.astype(jnp.float32), wf2.astype(bf16)]

    def _const_spec(p):
        nd = p.ndim
        return pl.BlockSpec(p.shape, lambda b, qi, _nd=nd: (0,) * _nd)

    def _batch_spec(p):                  # full per-batch block, invariant along qi
        return pl.BlockSpec((1,) + p.shape[1:], lambda b, qi: (b, 0, 0, 0))

    in_specs = [
        pl.BlockSpec((1, tq, D), lambda b, qi: (b, qi, 0)),    # residual / query tile
        _batch_spec(k1), _batch_spec(v1),                      # self-attn K/V (B,H,N,dh)
        _batch_spec(k2), _batch_spec(v2),                      # cross-attn K/V (B,H,M,dh)
        _const_spec(vecs),
    ] + [_const_spec(w) for w in weights]

    out_spec = pl.BlockSpec((1, tq, D), lambda b, qi: (b, qi, 0))

    kernel = functools.partial(block_kernel, heads=heads, d_head=d_head,
                               scale=d_head ** -0.5,
                               kv_chunk_self=kv_self, kv_chunk_cross=kv_cross)

    return pl.pallas_call(
        kernel,
        out_shape=jax.ShapeDtypeStruct((B, N, D), x.dtype),
        grid_spec=pltpu.PrefetchScalarGridSpec(
            num_scalar_prefetch=0,
            grid=(B, n_qt),
            in_specs=in_specs,
            out_specs=out_spec,
        ),
        compiler_params=pltpu.CompilerParams(
            dimension_semantics=("parallel", "parallel"),
            vmem_limit_bytes=int(vmem_limit),
        ),
    )(x, k1, v1, k2, v2, vecs, *weights)


# ----------------------- pure-JAX reference (for checking) -------------------
def reference_block(x, context, params, *, heads, d_head):
    (n1w, n1b, wq1, wk1, wv1, wo1, bo1,
     n2w, n2b, wq2, wk2, wv2, wo2, bo2,
     n3w, n3b, wf1, bf1, wf2, bf2) = params

    def layernorm(h, w, b):
        mu = jnp.mean(h, axis=-1, keepdims=True)
        var = jnp.mean((h - mu) ** 2, axis=-1, keepdims=True)
        return (h - mu) / jnp.sqrt(var + 1e-5) * w[0] + b[0]

    def mha(q_in, kv_in, wq, wk, wv, wo, bo):
        B, N, _ = q_in.shape
        M = kv_in.shape[1]
        q = q_in @ wq
        k = kv_in @ wk
        v = kv_in @ wv
        q = q.reshape(B, N, heads, d_head).transpose(0, 2, 1, 3)
        k = k.reshape(B, M, heads, d_head).transpose(0, 2, 1, 3)
        v = v.reshape(B, M, heads, d_head).transpose(0, 2, 1, 3)
        s = jnp.einsum("bhnd,bhmd->bhnm", q, k) * (d_head ** -0.5)
        p = jax.nn.softmax(s, axis=-1)
        o = jnp.einsum("bhnm,bhmd->bhnd", p, v)
        o = o.transpose(0, 2, 1, 3).reshape(B, N, heads * d_head)
        return o @ wo + bo[0]

    h1 = layernorm(x, n1w, n1b)
    x = x + mha(h1, h1, wq1, wk1, wv1, wo1, bo1)
    h2 = layernorm(x, n2w, n2b)
    x = x + mha(h2, context, wq2, wk2, wv2, wo2, bo2)
    h3 = layernorm(x, n3w, n3b)
    proj = h3 @ wf1 + bf1[0]
    F_in = wf2.shape[0]
    a, gate = proj[..., :F_in], proj[..., F_in:]
    ff = a * jax.nn.gelu(gate, approximate=False)
    return x + ff @ wf2 + bf2[0]


# ------------------------------ main ------------------------------------------
if __name__ == "__main__":
    # small shapes: dim=32, heads=4, d_head=8 -> inner_dim=32; context_dim=16
    B, N, M = 2, 8, 8
    dim, heads, d_head = 32, 4, 8
    inner = heads * d_head
    ctx_dim = 16
    ff_inner = dim * 4          # FeedForward mult=4 (GEGLU -> proj out is 2*ff_inner)

    key = jax.random.PRNGKey(0)
    ks = jax.random.split(key, 32)
    it = iter(ks)

    def w(shape, scale=0.05):
        return jax.random.normal(next(it), shape, jnp.float32) * scale

    params = [
        # norm1
        jnp.ones((1, dim), jnp.float32), jnp.zeros((1, dim), jnp.float32),
        # attn1 (self): to_q, to_k, to_v (no bias), to_out (with bias)
        w((dim, inner)), w((dim, inner)), w((dim, inner)),
        w((inner, dim)), w((1, dim)),
        # norm2
        jnp.ones((1, dim), jnp.float32), jnp.zeros((1, dim), jnp.float32),
        # attn2 (cross): q from dim, k/v from ctx_dim
        w((dim, inner)), w((ctx_dim, inner)), w((ctx_dim, inner)),
        w((inner, dim)), w((1, dim)),
        # norm3
        jnp.ones((1, dim), jnp.float32), jnp.zeros((1, dim), jnp.float32),
        # GEGLU proj (dim -> 2*ff_inner) + out proj (ff_inner -> dim)
        w((dim, 2 * ff_inner)), w((1, 2 * ff_inner)),
        w((ff_inner, dim)), w((1, dim)),
    ]

    x = jax.random.normal(next(it), (B, N, dim), jnp.float32)
    context = jax.random.normal(next(it), (B, M, ctx_dim), jnp.float32)

    out = basic_transformer_block(x, context, params, heads=heads, d_head=d_head)
    out = jax.block_until_ready(out)

    ref = reference_block(x, context, params, heads=heads, d_head=d_head)
    assert out.shape == (B, N, dim)
    max_err = float(jnp.max(jnp.abs(out - ref)))
    # bf16 matmul operands + approx reciprocal -> slightly looser tolerance than pure f32.
    assert jnp.allclose(out, ref, rtol=2e-2, atol=2e-2), f"mismatch vs reference: {max_err}"

    print("KERNEL_OK")
</pallas_src>

<mosaic_0001>
module attributes {stable_mosaic.version = 11 : i64} {
  func.func @block_kernel(%arg0: i32, %arg1: i32, %arg2: memref<1x8x32xf32, #tpu.memory_space<vmem>>, %arg3: memref<1x4x8x8xbf16, #tpu.memory_space<vmem>>, %arg4: memref<1x4x8x8xbf16, #tpu.memory_space<vmem>>, %arg5: memref<1x4x8x8xbf16, #tpu.memory_space<vmem>>, %arg6: memref<1x4x8x8xbf16, #tpu.memory_space<vmem>>, %arg7: memref<9x32xf32, #tpu.memory_space<vmem>>, %arg8: memref<32x32xbf16, #tpu.memory_space<vmem>>, %arg9: memref<32x32xbf16, #tpu.memory_space<vmem>>, %arg10: memref<32x32xbf16, #tpu.memory_space<vmem>>, %arg11: memref<32x32xbf16, #tpu.memory_space<vmem>>, %arg12: memref<32x256xbf16, #tpu.memory_space<vmem>>, %arg13: memref<1x256xf32, #tpu.memory_space<vmem>>, %arg14: memref<128x32xbf16, #tpu.memory_space<vmem>>, %arg15: memref<1x8x32xf32, #tpu.memory_space<vmem>>) attributes {dimension_semantics = [#tpu.dimension_semantics<parallel>, #tpu.dimension_semantics<parallel>], iteration_bounds = array<i64: 2, 1>, scalar_prefetch = 0 : i64, scratch_operands = 0 : i64, tpu.core_type = #tpu.core_type<tc>, window_params = [{transform_indices = @transform_0, window_bounds = array<i64: 1, 8, 32>}, {transform_indices = @transform_1, window_bounds = array<i64: 1, 4, 8, 8>}, {transform_indices = @transform_2, window_bounds = array<i64: 1, 4, 8, 8>}, {transform_indices = @transform_3, window_bounds = array<i64: 1, 4, 8, 8>}, {transform_indices = @transform_4, window_bounds = array<i64: 1, 4, 8, 8>}, {pipeline_mode = #tpu.pipeline_mode<synchronous>, transform_indices = @transform_5, window_bounds = array<i64: 9, 32>}, {pipeline_mode = #tpu.pipeline_mode<synchronous>, transform_indices = @transform_6, window_bounds = array<i64: 32, 32>}, {pipeline_mode = #tpu.pipeline_mode<synchronous>, transform_indices = @transform_7, window_bounds = array<i64: 32, 32>}, {pipeline_mode = #tpu.pipeline_mode<synchronous>, transform_indices = @transform_8, window_bounds = array<i64: 32, 32>}, {pipeline_mode = #tpu.pipeline_mode<synchronous>, transform_indices = @transform_9, window_bounds = array<i64: 32, 32>}, {pipeline_mode = #tpu.pipeline_mode<synchronous>, transform_indices = @transform_10, window_bounds = array<i64: 32, 256>}, {pipeline_mode = #tpu.pipeline_mode<synchronous>, transform_indices = @transform_11, window_bounds = array<i64: 1, 256>}, {pipeline_mode = #tpu.pipeline_mode<synchronous>, transform_indices = @transform_12, window_bounds = array<i64: 128, 32>}, {transform_indices = @transform_13, window_bounds = array<i64: 1, 8, 32>}]} {
    %c0 = arith.constant 0 : index
    %c0_0 = arith.constant 0 : index
    %c0_1 = arith.constant 0 : index
    %0 = vector.load %arg2[%c0, %c0_0, %c0_1] : memref<1x8x32xf32, #tpu.memory_space<vmem>>, vector<1x8x32xf32>
    %1 = vector.shape_cast %0 : vector<1x8x32xf32> to vector<8x32xf32>
    %c0_2 = arith.constant 0 : index
    %c0_3 = arith.constant 0 : index
    %2 = vector.load %arg7[%c0_2, %c0_3] : memref<9x32xf32, #tpu.memory_space<vmem>>, vector<9x32xf32>
    %3 = vector.extract_strided_slice %2 {offsets = [0, 0], sizes = [1, 32], strides = [1, 1]} : vector<9x32xf32> to vector<1x32xf32>
    %4 = vector.extract_strided_slice %2 {offsets = [1, 0], sizes = [1, 32], strides = [1, 1]} : vector<9x32xf32> to vector<1x32xf32>
    %5 = vector.extract_strided_slice %2 {offsets = [2, 0], sizes = [1, 32], strides = [1, 1]} : vector<9x32xf32> to vector<1x32xf32>
    %6 = vector.extract_strided_slice %2 {offsets = [3, 0], sizes = [1, 32], strides = [1, 1]} : vector<9x32xf32> to vector<1x32xf32>
    %7 = vector.extract_strided_slice %2 {offsets = [4, 0], sizes = [1, 32], strides = [1, 1]} : vector<9x32xf32> to vector<1x32xf32>
    %8 = vector.extract_strided_slice %2 {offsets = [5, 0], sizes = [1, 32], strides = [1, 1]} : vector<9x32xf32> to vector<1x32xf32>
    %9 = vector.extract_strided_slice %2 {offsets = [6, 0], sizes = [1, 32], strides = [1, 1]} : vector<9x32xf32> to vector<1x32xf32>
    %10 = vector.extract_strided_slice %2 {offsets = [7, 0], sizes = [1, 32], strides = [1, 1]} : vector<9x32xf32> to vector<1x32xf32>
    %11 = vector.extract_strided_slice %2 {offsets = [8, 0], sizes = [1, 32], strides = [1, 1]} : vector<9x32xf32> to vector<1x32xf32>
    %cst = arith.constant dense<0.000000e+00> : vector<8xf32>
    %12 = vector.multi_reduction <add>, %1, %cst [1] : vector<8x32xf32> to vector<8xf32>
    %13 = vector.shape_cast %12 : vector<8xf32> to vector<8x1xf32>
    %cst_4 = arith.constant 3.200000e+01 : f32
    %14 = vector.broadcast %cst_4 : f32 to vector<8x1xf32>
    %15 = arith.divf %13, %14 : vector<8x1xf32>
    %16 = vector.broadcast %15 : vector<8x1xf32> to vector<8x32xf32>
    %17 = arith.subf %1, %16 : vector<8x32xf32>
    %18 = arith.mulf %17, %17 : vector<8x32xf32>
    %cst_5 = arith.constant dense<0.000000e+00> : vector<8xf32>
    %19 = vector.multi_reduction <add>, %18, %cst_5 [1] : vector<8x32xf32> to vector<8xf32>
    %20 = vector.shape_cast %19 : vector<8xf32> to vector<8x1xf32>
    %cst_6 = arith.constant 3.200000e+01 : f32
    %21 = vector.broadcast %cst_6 : f32 to vector<8x1xf32>
    %22 = arith.divf %20, %21 : vector<8x1xf32>
    %23 = vector.broadcast %15 : vector<8x1xf32> to vector<8x32xf32>
    %24 = arith.subf %1, %23 : vector<8x32xf32>
    %cst_7 = arith.constant 9.99999974E-6 : f32
    %25 = vector.broadcast %cst_7 : f32 to vector<8x1xf32>
    %26 = arith.addf %22, %25 : vector<8x1xf32>
    %27 = math.rsqrt %26 : vector<8x1xf32>
    %28 = vector.broadcast %27 : vector<8x1xf32> to vector<8x32xf32>
    %29 = arith.mulf %24, %28 : vector<8x32xf32>
    %30 = vector.broadcast %3 : vector<1x32xf32> to vector<8x32xf32>
    %31 = arith.mulf %29, %30 : vector<8x32xf32>
    %32 = vector.broadcast %4 : vector<1x32xf32> to vector<8x32xf32>
    %33 = arith.addf %31, %32 : vector<8x32xf32>
    %34 = arith.truncf %33 : vector<8x32xf32> to vector<8x32xbf16>
    %c0_8 = arith.constant 0 : index
    %c0_9 = arith.constant 0 : index
    %35 = vector.load %arg8[%c0_8, %c0_9] : memref<32x32xbf16, #tpu.memory_space<vmem>>, vector<32x32xbf16>
    %cst_10 = arith.constant dense<0.000000e+00> : vector<8x32xf32>
    %36 = tpu.matmul %34, %35, %cst_10 {dimension_numbers = #tpu.dot_dimension_numbers<[1], [0], [0], [1], [0, 0, 1, 1], [], []>} : vector<8x32xbf16>, vector<32x32xbf16>, vector<8x32xf32> -> vector<8x32xf32>
    %cst_11 = arith.constant 0.353553385 : f32
    %37 = vector.broadcast %cst_11 : f32 to vector<8x32xf32>
    %38 = arith.mulf %36, %37 : vector<8x32xf32>
    %39 = vector.extract_strided_slice %38 {offsets = [0, 0], sizes = [8, 8], strides = [1, 1]} : vector<8x32xf32> to vector<8x8xf32>
    %40 = vector.extract_strided_slice %38 {offsets = [0, 8], sizes = [8, 8], strides = [1, 1]} : vector<8x32xf32> to vector<8x8xf32>
    %41 = vector.extract_strided_slice %38 {offsets = [0, 16], sizes = [8, 8], strides = [1, 1]} : vector<8x32xf32> to vector<8x8xf32>
    %42 = vector.extract_strided_slice %38 {offsets = [0, 24], sizes = [8, 8], strides = [1, 1]} : vector<8x32xf32> to vector<8x8xf32>
    %43 = vector.shape_cast %39 : vector<8x8xf32> to vector<1x8x8xf32>
    %44 = vector.shape_cast %40 : vector<8x8xf32> to vector<1x8x8xf32>
    %45 = vector.shape_cast %41 : vector<8x8xf32> to vector<1x8x8xf32>
    %46 = vector.shape_cast %42 : vector<8x8xf32> to vector<1x8x8xf32>
    %47 = tpu.concatenate %43, %44, %45, %46 in 0 : vector<1x8x8xf32>, vector<1x8x8xf32>, vector<1x8x8xf32>, vector<1x8x8xf32> -> vector<4x8x8xf32>
    %48 = arith.truncf %47 : vector<4x8x8xf32> to vector<4x8x8xbf16>
    %cst_12 = arith.constant 0xFF800000 : f32
    %49 = vector.broadcast %cst_12 : f32 to vector<4x8x1xf32>
    %cst_13 = arith.constant 0.000000e+00 : f32
    %50 = vector.broadcast %cst_13 : f32 to vector<4x8x1xf32>
    %cst_14 = arith.constant 0.000000e+00 : f32
    %51 = vector.broadcast %cst_14 : f32 to vector<4x8x8xf32>
    %c0_15 = arith.constant 0 : index
    %c0_16 = arith.constant 0 : index
    %c0_17 = arith.constant 0 : index
    %c0_18 = arith.constant 0 : index
    %52 = vector.load %arg3[%c0_15, %c0_16, %c0_17, %c0_18] : memref<1x4x8x8xbf16, #tpu.memory_space<vmem>>, vector<1x4x8x8xbf16>
    %53 = vector.shape_cast %52 : vector<1x4x8x8xbf16> to vector<4x8x8xbf16>
    %c0_19 = arith.constant 0 : index
    %c0_20 = arith.constant 0 : index
    %c0_21 = arith.constant 0 : index
    %c0_22 = arith.constant 0 : index
    %54 = vector.load %arg4[%c0_19, %c0_20, %c0_21, %c0_22] : memref<1x4x8x8xbf16, #tpu.memory_space<vmem>>, vector<1x4x8x8xbf16>
    %55 = vector.shape_cast %54 : vector<1x4x8x8xbf16> to vector<4x8x8xbf16>
    "tpu.trace_start"() <{level = 10 : i32, message = "hqd,hkd->hqk"}> : () -> ()
    %cst_23 = arith.constant dense<0.000000e+00> : vector<4x8x8xf32>
    %56 = tpu.matmul %48, %53, %cst_23 {dimension_numbers = #tpu.dot_dimension_numbers<[2], [2], [1], [1], [0, 0, 0, 1, 1, 1], [0], [0]>} : vector<4x8x8xbf16>, vector<4x8x8xbf16>, vector<4x8x8xf32> -> vector<4x8x8xf32>
    "tpu.trace_stop"() : () -> ()
    %cst_24 = arith.constant dense<0xFF800000> : vector<4x8xf32>
    %57 = vector.multi_reduction <maximumf>, %56, %cst_24 [2] : vector<4x8x8xf32> to vector<4x8xf32>
    %58 = vector.shape_cast %57 : vector<4x8xf32> to vector<4x8x1xf32>
    %59 = arith.maximumf %49, %58 : vector<4x8x1xf32>
    %60 = arith.subf %49, %59 : vector<4x8x1xf32>
    %61 = math.exp %60 : vector<4x8x1xf32>
    %62 = vector.broadcast %59 : vector<4x8x1xf32> to vector<4x8x8xf32>
    %63 = arith.subf %56, %62 : vector<4x8x8xf32>
    %64 = math.exp %63 : vector<4x8x8xf32>
    %65 = arith.mulf %61, %50 : vector<4x8x1xf32>
    %cst_25 = arith.constant dense<0.000000e+00> : vector<4x8xf32>
    %66 = vector.multi_reduction <add>, %64, %cst_25 [2] : vector<4x8x8xf32> to vector<4x8xf32>
    %67 = vector.shape_cast %66 : vector<4x8xf32> to vector<4x8x1xf32>
    %68 = arith.addf %65, %67 : vector<4x8x1xf32>
    %69 = vector.broadcast %61 : vector<4x8x1xf32> to vector<4x8x8xf32>
    %70 = arith.mulf %69, %51 : vector<4x8x8xf32>
    %71 = arith.truncf %64 : vector<4x8x8xf32> to vector<4x8x8xbf16>
    "tpu.trace_start"() <{level = 10 : i32, message = "hqk,hkd->hqd"}> : () -> ()
    %cst_26 = arith.constant dense<0.000000e+00> : vector<4x8x8xf32>
    %72 = tpu.matmul %71, %55, %cst_26 {dimension_numbers = #tpu.dot_dimension_numbers<[2], [1], [1], [2], [0, 0, 0, 1, 1, 2], [0], [0]>} : vector<4x8x8xbf16>, vector<4x8x8xbf16>, vector<4x8x8xf32> -> vector<4x8x8xf32>
    "tpu.trace_stop"() : () -> ()
    %73 = arith.addf %70, %72 : vector<4x8x8xf32>
    %74 = tpu.reciprocal %68 {approx = true} : vector<4x8x1xf32> -> vector<4x8x1xf32>
    %75 = vector.broadcast %74 : vector<4x8x1xf32> to vector<4x8x8xf32>
    %76 = arith.mulf %73, %75 : vector<4x8x8xf32>
    %77 = vector.extract_strided_slice %76 {offsets = [0, 0, 0], sizes = [1, 8, 8], strides = [1, 1, 1]} : vector<4x8x8xf32> to vector<1x8x8xf32>
    %78 = vector.shape_cast %77 : vector<1x8x8xf32> to vector<8x8xf32>
    %79 = vector.extract_strided_slice %76 {offsets = [1, 0, 0], sizes = [1, 8, 8], strides = [1, 1, 1]} : vector<4x8x8xf32> to vector<1x8x8xf32>
    %80 = vector.shape_cast %79 : vector<1x8x8xf32> to vector<8x8xf32>
    %81 = vector.extract_strided_slice %76 {offsets = [2, 0, 0], sizes = [1, 8, 8], strides = [1, 1, 1]} : vector<4x8x8xf32> to vector<1x8x8xf32>
    %82 = vector.shape_cast %81 : vector<1x8x8xf32> to vector<8x8xf32>
    %83 = vector.extract_strided_slice %76 {offsets = [3, 0, 0], sizes = [1, 8, 8], strides = [1, 1, 1]} : vector<4x8x8xf32> to vector<1x8x8xf32>
    %84 = vector.shape_cast %83 : vector<1x8x8xf32> to vector<8x8xf32>
    %85 = tpu.concatenate %78, %80, %82, %84 in 1 : vector<8x8xf32>, vector<8x8xf32>, vector<8x8xf32>, vector<8x8xf32> -> vector<8x32xf32>
    %86 = arith.truncf %85 : vector<8x32xf32> to vector<8x32xbf16>
    %c0_27 = arith.constant 0 : index
    %c0_28 = arith.constant 0 : index
    %87 = vector.load %arg9[%c0_27, %c0_28] : memref<32x32xbf16, #tpu.memory_space<vmem>>, vector<32x32xbf16>
    %cst_29 = arith.constant dense<0.000000e+00> : vector<8x32xf32>
    %88 = tpu.matmul %86, %87, %cst_29 {dimension_numbers = #tpu.dot_dimension_numbers<[1], [0], [0], [1], [0, 0, 1, 1], [], []>} : vector<8x32xbf16>, vector<32x32xbf16>, vector<8x32xf32> -> vector<8x32xf32>
    %89 = vector.broadcast %9 : vector<1x32xf32> to vector<8x32xf32>
    %90 = arith.addf %88, %89 : vector<8x32xf32>
    %91 = arith.addf %1, %90 : vector<8x32xf32>
    %cst_30 = arith.constant dense<0.000000e+00> : vector<8xf32>
    %92 = vector.multi_reduction <add>, %91, %cst_30 [1] : vector<8x32xf32> to vector<8xf32>
    %93 = vector.shape_cast %92 : vector<8xf32> to vector<8x1xf32>
    %cst_31 = arith.constant 3.200000e+01 : f32
    %94 = vector.broadcast %cst_31 : f32 to vector<8x1xf32>
    %95 = arith.divf %93, %94 : vector<8x1xf32>
    %96 = vector.broadcast %95 : vector<8x1xf32> to vector<8x32xf32>
    %97 = arith.subf %91, %96 : vector<8x32xf32>
    %98 = arith.mulf %97, %97 : vector<8x32xf32>
    %cst_32 = arith.constant dense<0.000000e+00> : vector<8xf32>
    %99 = vector.multi_reduction <add>, %98, %cst_32 [1] : vector<8x32xf32> to vector<8xf32>
    %100 = vector.shape_cast %99 : vector<8xf32> to vector<8x1xf32>
    %cst_33 = arith.constant 3.200000e+01 : f32
    %101 = vector.broadcast %cst_33 : f32 to vector<8x1xf32>
    %102 = arith.divf %100, %101 : vector<8x1xf32>
    %103 = vector.broadcast %95 : vector<8x1xf32> to vector<8x32xf32>
    %104 = arith.subf %91, %103 : vector<8x32xf32>
    %cst_34 = arith.constant 9.99999974E-6 : f32
    %105 = vector.broadcast %cst_34 : f32 to vector<8x1xf32>
    %106 = arith.addf %102, %105 : vector<8x1xf32>
    %107 = math.rsqrt %106 : vector<8x1xf32>
    %108 = vector.broadcast %107 : vector<8x1xf32> to vector<8x32xf32>
    %109 = arith.mulf %104, %108 : vector<8x32xf32>
    %110 = vector.broadcast %5 : vector<1x32xf32> to vector<8x32xf32>
    %111 = arith.mulf %109, %110 : vector<8x32xf32>
    %112 = vector.broadcast %6 : vector<1x32xf32> to vector<8x32xf32>
    %113 = arith.addf %111, %112 : vector<8x32xf32>
    %114 = arith.truncf %113 : vector<8x32xf32> to vector<8x32xbf16>
    %c0_35 = arith.constant 0 : index
    %c0_36 = arith.constant 0 : index
    %115 = vector.load %arg10[%c0_35, %c0_36] : memref<32x32xbf16, #tpu.memory_space<vmem>>, vector<32x32xbf16>
    %cst_37 = arith.constant dense<0.000000e+00> : vector<8x32xf32>
    %116 = tpu.matmul %114, %115, %cst_37 {dimension_numbers = #tpu.dot_dimension_numbers<[1], [0], [0], [1], [0, 0, 1, 1], [], []>} : vector<8x32xbf16>, vector<32x32xbf16>, vector<8x32xf32> -> vector<8x32xf32>
    %cst_38 = arith.constant 0.353553385 : f32
    %117 = vector.broadcast %cst_38 : f32 to vector<8x32xf32>
    %118 = arith.mulf %116, %117 : vector<8x32xf32>
    %119 = vector.extract_strided_slice %118 {offsets = [0, 0], sizes = [8, 8], strides = [1, 1]} : vector<8x32xf32> to vector<8x8xf32>
    %120 = vector.extract_strided_slice %118 {offsets = [0, 8], sizes = [8, 8], strides = [1, 1]} : vector<8x32xf32> to vector<8x8xf32>
    %121 = vector.extract_strided_slice %118 {offsets = [0, 16], sizes = [8, 8], strides = [1, 1]} : vector<8x32xf32> to vector<8x8xf32>
    %122 = vector.extract_strided_slice %118 {offsets = [0, 24], sizes = [8, 8], strides = [1, 1]} : vector<8x32xf32> to vector<8x8xf32>
    %123 = vector.shape_cast %119 : vector<8x8xf32> to vector<1x8x8xf32>
    %124 = vector.shape_cast %120 : vector<8x8xf32> to vector<1x8x8xf32>
    %125 = vector.shape_cast %121 : vector<8x8xf32> to vector<1x8x8xf32>
    %126 = vector.shape_cast %122 : vector<8x8xf32> to vector<1x8x8xf32>
    %127 = tpu.concatenate %123, %124, %125, %126 in 0 : vector<1x8x8xf32>, vector<1x8x8xf32>, vector<1x8x8xf32>, vector<1x8x8xf32> -> vector<4x8x8xf32>
    %128 = arith.truncf %127 : vector<4x8x8xf32> to vector<4x8x8xbf16>
    %cst_39 = arith.constant 0xFF800000 : f32
    %129 = vector.broadcast %cst_39 : f32 to vector<4x8x1xf32>
    %cst_40 = arith.constant 0.000000e+00 : f32
    %130 = vector.broadcast %cst_40 : f32 to vector<4x8x1xf32>
    %cst_41 = arith.constant 0.000000e+00 : f32
    %131 = vector.broadcast %cst_41 : f32 to vector<4x8x8xf32>
    %c0_42 = arith.constant 0 : index
    %c0_43 = arith.constant 0 : index
    %c0_44 = arith.constant 0 : index
    %c0_45 = arith.constant 0 : index
    %132 = vector.load %arg5[%c0_42, %c0_43, %c0_44, %c0_45] : memref<1x4x8x8xbf16, #tpu.memory_space<vmem>>, vector<1x4x8x8xbf16>
    %133 = vector.shape_cast %132 : vector<1x4x8x8xbf16> to vector<4x8x8xbf16>
    %c0_46 = arith.constant 0 : index
    %c0_47 = arith.constant 0 : index
    %c0_48 = arith.constant 0 : index
    %c0_49 = arith.constant 0 : index
    %134 = vector.load %arg6[%c0_46, %c0_47, %c0_48, %c0_49] : memref<1x4x8x8xbf16, #tpu.memory_space<vmem>>, vector<1x4x8x8xbf16>
    %135 = vector.shape_cast %134 : vector<1x4x8x8xbf16> to vector<4x8x8xbf16>
    "tpu.trace_start"() <{level = 10 : i32, message = "hqd,hkd->hqk"}> : () -> ()
    %cst_50 = arith.constant dense<0.000000e+00> : vector<4x8x8xf32>
    %136 = tpu.matmul %128, %133, %cst_50 {dimension_numbers = #tpu.dot_dimension_numbers<[2], [2], [1], [1], [0, 0, 0, 1, 1, 1], [0], [0]>} : vector<4x8x8xbf16>, vector<4x8x8xbf16>, vector<4x8x8xf32> -> vector<4x8x8xf32>
    "tpu.trace_stop"() : () -> ()
    %cst_51 = arith.constant dense<0xFF800000> : vector<4x8xf32>
    %137 = vector.multi_reduction <maximumf>, %136, %cst_51 [2] : vector<4x8x8xf32> to vector<4x8xf32>
    %138 = vector.shape_cast %137 : vector<4x8xf32> to vector<4x8x1xf32>
    %139 = arith.maximumf %129, %138 : vector<4x8x1xf32>
    %140 = arith.subf %129, %139 : vector<4x8x1xf32>
    %141 = math.exp %140 : vector<4x8x1xf32>
    %142 = vector.broadcast %139 : vector<4x8x1xf32> to vector<4x8x8xf32>
    %143 = arith.subf %136, %142 : vector<4x8x8xf32>
    %144 = math.exp %143 : vector<4x8x8xf32>
    %145 = arith.mulf %141, %130 : vector<4x8x1xf32>
    %cst_52 = arith.constant dense<0.000000e+00> : vector<4x8xf32>
    %146 = vector.multi_reduction <add>, %144, %cst_52 [2] : vector<4x8x8xf32> to vector<4x8xf32>
    %147 = vector.shape_cast %146 : vector<4x8xf32> to vector<4x8x1xf32>
    %148 = arith.addf %145, %147 : vector<4x8x1xf32>
    %149 = vector.broadcast %141 : vector<4x8x1xf32> to vector<4x8x8xf32>
    %150 = arith.mulf %149, %131 : vector<4x8x8xf32>
    %151 = arith.truncf %144 : vector<4x8x8xf32> to vector<4x8x8xbf16>
    "tpu.trace_start"() <{level = 10 : i32, message = "hqk,hkd->hqd"}> : () -> ()
    %cst_53 = arith.constant dense<0.000000e+00> : vector<4x8x8xf32>
    %152 = tpu.matmul %151, %135, %cst_53 {dimension_numbers = #tpu.dot_dimension_numbers<[2], [1], [1], [2], [0, 0, 0, 1, 1, 2], [0], [0]>} : vector<4x8x8xbf16>, vector<4x8x8xbf16>, vector<4x8x8xf32> -> vector<4x8x8xf32>
    "tpu.trace_stop"() : () -> ()
    %153 = arith.addf %150, %152 : vector<4x8x8xf32>
    %154 = tpu.reciprocal %148 {approx = true} : vector<4x8x1xf32> -> vector<4x8x1xf32>
    %155 = vector.broadcast %154 : vector<4x8x1xf32> to vector<4x8x8xf32>
    %156 = arith.mulf %153, %155 : vector<4x8x8xf32>
    %157 = vector.extract_strided_slice %156 {offsets = [0, 0, 0], sizes = [1, 8, 8], strides = [1, 1, 1]} : vector<4x8x8xf32> to vector<1x8x8xf32>
    %158 = vector.shape_cast %157 : vector<1x8x8xf32> to vector<8x8xf32>
    %159 = vector.extract_strided_slice %156 {offsets = [1, 0, 0], sizes = [1, 8, 8], strides = [1, 1, 1]} : vector<4x8x8xf32> to vector<1x8x8xf32>
    %160 = vector.shape_cast %159 : vector<1x8x8xf32> to vector<8x8xf32>
    %161 = vector.extract_strided_slice %156 {offsets = [2, 0, 0], sizes = [1, 8, 8], strides = [1, 1, 1]} : vector<4x8x8xf32> to vector<1x8x8xf32>
    %162 = vector.shape_cast %161 : vector<1x8x8xf32> to vector<8x8xf32>
    %163 = vector.extract_strided_slice %156 {offsets = [3, 0, 0], sizes = [1, 8, 8], strides = [1, 1, 1]} : vector<4x8x8xf32> to vector<1x8x8xf32>
    %164 = vector.shape_cast %163 : vector<1x8x8xf32> to vector<8x8xf32>
    %165 = tpu.concatenate %158, %160, %162, %164 in 1 : vector<8x8xf32>, vector<8x8xf32>, vector<8x8xf32>, vector<8x8xf32> -> vector<8x32xf32>
    %166 = arith.truncf %165 : vector<8x32xf32> to vector<8x32xbf16>
    %c0_54 = arith.constant 0 : index
    %c0_55 = arith.constant 0 : index
    %167 = vector.load %arg11[%c0_54, %c0_55] : memref<32x32xbf16, #tpu.memory_space<vmem>>, vector<32x32xbf16>
    %cst_56 = arith.constant dense<0.000000e+00> : vector<8x32xf32>
    %168 = tpu.matmul %166, %167, %cst_56 {dimension_numbers = #tpu.dot_dimension_numbers<[1], [0], [0], [1], [0, 0, 1, 1], [], []>} : vector<8x32xbf16>, vector<32x32xbf16>, vector<8x32xf32> -> vector<8x32xf32>
    %169 = vector.broadcast %10 : vector<1x32xf32> to vector<8x32xf32>
    %170 = arith.addf %168, %169 : vector<8x32xf32>
    %171 = arith.addf %91, %170 : vector<8x32xf32>
    %cst_57 = arith.constant dense<0.000000e+00> : vector<8xf32>
    %172 = vector.multi_reduction <add>, %171, %cst_57 [1] : vector<8x32xf32> to vector<8xf32>
    %173 = vector.shape_cast %172 : vector<8xf32> to vector<8x1xf32>
    %cst_58 = arith.constant 3.200000e+01 : f32
    %174 = vector.broadcast %cst_58 : f32 to vector<8x1xf32>
    %175 = arith.divf %173, %174 : vector<8x1xf32>
    %176 = vector.broadcast %175 : vector<8x1xf32> to vector<8x32xf32>
    %177 = arith.subf %171, %176 : vector<8x32xf32>
    %178 = arith.mulf %177, %177 : vector<8x32xf32>
    %cst_59 = arith.constant dense<0.000000e+00> : vector<8xf32>
    %179 = vector.multi_reduction <add>, %178, %cst_59 [1] : vector<8x32xf32> to vector<8xf32>
    %180 = vector.shape_cast %179 : vector<8xf32> to vector<8x1xf32>
    %cst_60 = arith.constant 3.200000e+01 : f32
    %181 = vector.broadcast %cst_60 : f32 to vector<8x1xf32>
    %182 = arith.divf %180, %181 : vector<8x1xf32>
    %183 = vector.broadcast %175 : vector<8x1xf32> to vector<8x32xf32>
    %184 = arith.subf %171, %183 : vector<8x32xf32>
    %cst_61 = arith.constant 9.99999974E-6 : f32
    %185 = vector.broadcast %cst_61 : f32 to vector<8x1xf32>
    %186 = arith.addf %182, %185 : vector<8x1xf32>
    %187 = math.rsqrt %186 : vector<8x1xf32>
    %188 = vector.broadcast %187 : vector<8x1xf32> to vector<8x32xf32>
    %189 = arith.mulf %184, %188 : vector<8x32xf32>
    %190 = vector.broadcast %7 : vector<1x32xf32> to vector<8x32xf32>
    %191 = arith.mulf %189, %190 : vector<8x32xf32>
    %192 = vector.broadcast %8 : vector<1x32xf32> to vector<8x32xf32>
    %193 = arith.addf %191, %192 : vector<8x32xf32>
    %194 = arith.truncf %193 : vector<8x32xf32> to vector<8x32xbf16>
    %c0_62 = arith.constant 0 : index
    %c0_63 = arith.constant 0 : index
    %195 = vector.load %arg12[%c0_62, %c0_63] : memref<32x256xbf16, #tpu.memory_space<vmem>>, vector<32x256xbf16>
    %cst_64 = arith.constant dense<0.000000e+00> : vector<8x256xf32>
    %196 = tpu.matmul %194, %195, %cst_64 {dimension_numbers = #tpu.dot_dimension_numbers<[1], [0], [0], [1], [0, 0, 1, 1], [], []>} : vector<8x32xbf16>, vector<32x256xbf16>, vector<8x256xf32> -> vector<8x256xf32>
    %c0_65 = arith.constant 0 : index
    %c0_66 = arith.constant 0 : index
    %197 = vector.load %arg13[%c0_65, %c0_66] : memref<1x256xf32, #tpu.memory_space<vmem>>, vector<1x256xf32>
    %198 = vector.broadcast %197 : vector<1x256xf32> to vector<8x256xf32>
    %199 = arith.addf %196, %198 : vector<8x256xf32>
    %200 = vector.extract_strided_slice %199 {offsets = [0, 0], sizes = [8, 128], strides = [1, 1]} : vector<8x256xf32> to vector<8x128xf32>
    %201 = vector.extract_strided_slice %199 {offsets = [0, 128], sizes = [8, 128], strides = [1, 1]} : vector<8x256xf32> to vector<8x128xf32>
    %cst_67 = arith.constant 0.707106769 : f32
    %202 = vector.broadcast %cst_67 : f32 to vector<8x128xf32>
    %203 = arith.mulf %201, %202 : vector<8x128xf32>
    %204 = math.absf %203 : vector<8x128xf32>
    %cst_68 = arith.constant 0.327591091 : f32
    %205 = vector.broadcast %cst_68 : f32 to vector<8x128xf32>
    %206 = arith.mulf %205, %204 : vector<8x128xf32>
    %cst_69 = arith.constant 1.000000e+00 : f32
    %207 = vector.broadcast %cst_69 : f32 to vector<8x128xf32>
    %208 = arith.addf %207, %206 : vector<8x128xf32>
    %209 = tpu.reciprocal %208 {approx = true} : vector<8x128xf32> -> vector<8x128xf32>
    %cst_70 = arith.constant 1.06140542 : f32
    %210 = vector.broadcast %cst_70 : f32 to vector<8x128xf32>
    %211 = arith.mulf %209, %210 : vector<8x128xf32>
    %cst_71 = arith.constant -1.45315206 : f32
    %212 = vector.broadcast %cst_71 : f32 to vector<8x128xf32>
    %213 = arith.addf %212, %211 : vector<8x128xf32>
    %214 = arith.mulf %209, %213 : vector<8x128xf32>
    %cst_72 = arith.constant 1.42141378 : f32
    %215 = vector.broadcast %cst_72 : f32 to vector<8x128xf32>
    %216 = arith.addf %215, %214 : vector<8x128xf32>
    %217 = arith.mulf %209, %216 : vector<8x128xf32>
    %cst_73 = arith.constant -0.284496725 : f32
    %218 = vector.broadcast %cst_73 : f32 to vector<8x128xf32>
    %219 = arith.addf %218, %217 : vector<8x128xf32>
    %220 = arith.mulf %209, %219 : vector<8x128xf32>
    %cst_74 = arith.constant 0.254829586 : f32
    %221 = vector.broadcast %cst_74 : f32 to vector<8x128xf32>
    %222 = arith.addf %221, %220 : vector<8x128xf32>
    %223 = arith.mulf %209, %222 : vector<8x128xf32>
    %cst_75 = arith.constant 0.000000e+00 : f32
    %224 = vector.broadcast %cst_75 : f32 to vector<8x128xf32>
    %225 = arith.subf %224, %204 : vector<8x128xf32>
    %226 = arith.mulf %225, %204 : vector<8x128xf32>
    %227 = math.exp %226 : vector<8x128xf32>
    %228 = arith.mulf %223, %227 : vector<8x128xf32>
    %cst_76 = arith.constant 1.000000e+00 : f32
    %229 = vector.broadcast %cst_76 : f32 to vector<8x128xf32>
    %230 = arith.subf %229, %228 : vector<8x128xf32>
    %cst_77 = arith.constant 0.000000e+00 : f32
    %231 = vector.broadcast %cst_77 : f32 to vector<8x128xf32>
    %232 = arith.cmpf oge, %203, %231 : vector<8x128xf32>
    %cst_78 = arith.constant 0.000000e+00 : f32
    %233 = vector.broadcast %cst_78 : f32 to vector<8x128xf32>
    %234 = arith.subf %233, %230 : vector<8x128xf32>
    %235 = arith.select %232, %230, %234 : vector<8x128xi1>, vector<8x128xf32>
    %cst_79 = arith.constant 5.000000e-01 : f32
    %236 = vector.broadcast %cst_79 : f32 to vector<8x128xf32>
    %237 = arith.mulf %236, %201 : vector<8x128xf32>
    %cst_80 = arith.constant 1.000000e+00 : f32
    %238 = vector.broadcast %cst_80 : f32 to vector<8x128xf32>
    %239 = arith.addf %238, %235 : vector<8x128xf32>
    %240 = arith.mulf %237, %239 : vector<8x128xf32>
    %241 = arith.mulf %200, %240 : vector<8x128xf32>
    %242 = arith.truncf %241 : vector<8x128xf32> to vector<8x128xbf16>
    %c0_81 = arith.constant 0 : index
    %c0_82 = arith.constant 0 : index
    %243 = vector.load %arg14[%c0_81, %c0_82] : memref<128x32xbf16, #tpu.memory_space<vmem>>, vector<128x32xbf16>
    %cst_83 = arith.constant dense<0.000000e+00> : vector<8x32xf32>
    %244 = tpu.matmul %242, %243, %cst_83 {dimension_numbers = #tpu.dot_dimension_numbers<[1], [0], [0], [1], [0, 0, 1, 1], [], []>} : vector<8x128xbf16>, vector<128x32xbf16>, vector<8x32xf32> -> vector<8x32xf32>
    %245 = arith.addf %171, %244 : vector<8x32xf32>
    %246 = vector.broadcast %11 : vector<1x32xf32> to vector<8x32xf32>
    %247 = arith.addf %245, %246 : vector<8x32xf32>
    %c0_84 = arith.constant 0 : index
    %c0_85 = arith.constant 0 : index
    %c0_86 = arith.constant 0 : index
    %248 = vector.load %arg15[%c0_84, %c0_85, %c0_86] : memref<1x8x32xf32, #tpu.memory_space<vmem>>, vector<1x8x32xf32>
    %249 = vector.shape_cast %248 : vector<1x8x32xf32> to vector<8x32xf32>
    %250 = vector.shape_cast %247 : vector<8x32xf32> to vector<1x8x32xf32>
    tpu.vector_store %arg15[%c0_84, %c0_85, %c0_86], %250 {strides = array<i32>} : memref<1x8x32xf32, #tpu.memory_space<vmem>>, vector<1x8x32xf32>,
    return
  }
  func.func @transform_0(%arg0: i32, %arg1: i32) -> (i32, i32, i32) {
    %c0_i32 = arith.constant 0 : i32
    %c0_i32_0 = arith.constant 0 : i32
    return %arg0, %arg1, %c0_i32 : i32, i32, i32
  }
  func.func @transform_1(%arg0: i32, %arg1: i32) -> (i32, i32, i32, i32) {
    %c0_i32 = arith.constant 0 : i32
    %c0_i32_0 = arith.constant 0 : i32
    %c0_i32_1 = arith.constant 0 : i32
    %c0_i32_2 = arith.constant 0 : i32
    return %arg0, %c0_i32, %c0_i32_0, %c0_i32_1 : i32, i32, i32, i32
  }
  func.func @transform_2(%arg0: i32, %arg1: i32) -> (i32, i32, i32, i32) {
    %c0_i32 = arith.constant 0 : i32
    %c0_i32_0 = arith.constant 0 : i32
    %c0_i32_1 = arith.constant 0 : i32
    %c0_i32_2 = arith.constant 0 : i32
    return %arg0, %c0_i32, %c0_i32_0, %c0_i32_1 : i32, i32, i32, i32
  }
  func.func @transform_3(%arg0: i32, %arg1: i32) -> (i32, i32, i32, i32) {
    %c0_i32 = arith.constant 0 : i32
    %c0_i32_0 = arith.constant 0 : i32
    %c0_i32_1 = arith.constant 0 : i32
    %c0_i32_2 = arith.constant 0 : i32
    return %arg0, %c0_i32, %c0_i32_0, %c0_i32_1 : i32, i32, i32, i32
  }
  func.func @transform_4(%arg0: i32, %arg1: i32) -> (i32, i32, i32, i32) {
    %c0_i32 = arith.constant 0 : i32
    %c0_i32_0 = arith.constant 0 : i32
    %c0_i32_1 = arith.constant 0 : i32
    %c0_i32_2 = arith.constant 0 : i32
    return %arg0, %c0_i32, %c0_i32_0, %c0_i32_1 : i32, i32, i32, i32
  }
  func.func @transform_5(%arg0: i32, %arg1: i32) -> (i32, i32) {
    %c0_i32 = arith.constant 0 : i32
    %c0_i32_0 = arith.constant 0 : i32
    %c0_i32_1 = arith.constant 0 : i32
    return %c0_i32, %c0_i32_0 : i32, i32
  }
  func.func @transform_6(%arg0: i32, %arg1: i32) -> (i32, i32) {
    %c0_i32 = arith.constant 0 : i32
    %c0_i32_0 = arith.constant 0 : i32
    %c0_i32_1 = arith.constant 0 : i32
    return %c0_i32, %c0_i32_0 : i32, i32
  }
  func.func @transform_7(%arg0: i32, %arg1: i32) -> (i32, i32) {
    %c0_i32 = arith.constant 0 : i32
    %c0_i32_0 = arith.constant 0 : i32
    %c0_i32_1 = arith.constant 0 : i32
    return %c0_i32, %c0_i32_0 : i32, i32
  }
  func.func @transform_8(%arg0: i32, %arg1: i32) -> (i32, i32) {
    %c0_i32 = arith.constant 0 : i32
    %c0_i32_0 = arith.constant 0 : i32
    %c0_i32_1 = arith.constant 0 : i32
    return %c0_i32, %c0_i32_0 : i32, i32
  }
  func.func @transform_9(%arg0: i32, %arg1: i32) -> (i32, i32) {
    %c0_i32 = arith.constant 0 : i32
    %c0_i32_0 = arith.constant 0 : i32
    %c0_i32_1 = arith.constant 0 : i32
    return %c0_i32, %c0_i32_0 : i32, i32
  }
  func.func @transform_10(%arg0: i32, %arg1: i32) -> (i32, i32) {
    %c0_i32 = arith.constant 0 : i32
    %c0_i32_0 = arith.constant 0 : i32
    %c0_i32_1 = arith.constant 0 : i32
    return %c0_i32, %c0_i32_0 : i32, i32
  }
  func.func @transform_11(%arg0: i32, %arg1: i32) -> (i32, i32) {
    %c0_i32 = arith.constant 0 : i32
    %c0_i32_0 = arith.constant 0 : i32
    %c0_i32_1 = arith.constant 0 : i32
    return %c0_i32, %c0_i32_0 : i32, i32
  }
  func.func @transform_12(%arg0: i32, %arg1: i32) -> (i32, i32) {
    %c0_i32 = arith.constant 0 : i32
    %c0_i32_0 = arith.constant 0 : i32
    %c0_i32_1 = arith.constant 0 : i32
    return %c0_i32, %c0_i32_0 : i32, i32
  }
  func.func @transform_13(%arg0: i32, %arg1: i32) -> (i32, i32, i32) {
    %c0_i32 = arith.constant 0 : i32
    %c0_i32_0 = arith.constant 0 : i32
    return %arg0, %arg1, %c0_i32 : i32, i32, i32
  }
}

</mosaic_0001>

<bundles_post_ra>
// kernel: tpu_custom_call.1
= control target key start
LH: loop header
LB: loop body
LE: loop exit
PB: predicated region body
PF: predicated region fallthrough
CT: control target
= control target key end

     0   :  { %s3018_s0 = inlined_call_operand.vmem [shape: f32[2,8,32], index: 0, kind: input, shape index: {}]   ;;  %s3019_s1 = inlined_call_operand.vmem [shape: bf16[2,4,8,8], index: 1, kind: input, shape index: {}]   ;;  %s3020_s2 = inlined_call_operand.vmem [shape: bf16[2,4,8,8], index: 2, kind: input, shape index: {}]   ;;  %s3021_s3 = inlined_call_operand.hbm [shape: bf16[2,4,8,8], index: 3, kind: input, shape index: {}]   ;;  %s3022_s4 = inlined_call_operand.hbm [shape: bf16[2,4,8,8], index: 4, kind: input, shape index: {}]   ;;  %s3023_s5 = inlined_call_operand.hbm [shape: f32[9,32], index: 5, kind: input, shape index: {}]   ;;  %s3024_s6 = inlined_call_operand.hbm [shape: bf16[32,32], index: 6, kind: input, shape index: {}]   ;;  %s3025_s7 = inlined_call_operand.hbm [shape: bf16[32,32], index: 7, kind: input, shape index: {}]   ;;  %s3026_s8 = inlined_call_operand.hbm [shape: bf16[32,32], index: 8, kind: input, shape index: {}]   ;;  %s3027_s9 = inlined_call_operand.hbm [shape: bf16[32,32], index: 9, kind: input, shape index: {}]   ;;  %s3028_s10 = inlined_call_operand.hbm [shape: bf16[32,256], index: 10, kind: input, shape index: {}]   ;;  %s3029_s11 = inlined_call_operand.vmem [shape: f32[1,256], index: 11, kind: input, shape index: {}]   ;;  %s3030_s12 = inlined_call_operand.vmem [shape: bf16[128,32], index: 12, kind: input, shape index: {}]   ;;  %s3031_s13 = inlined_call_operand.hbm [shape: f32[2,8,32], index: 13, kind: output, shape index: {}]  }
   0x1   :  { %3042 = sst [smem:[#allocation29_spill]] %s3020_s2 }
   0x2   :  { %3043 = sst [smem:[#allocation30_spill]] %s3023_s5 }
   0x3   :  { %3044 = sst [smem:[#allocation31_spill]] %s3024_s6 }
   0x4   :  { %3045 = sst [smem:[#allocation32_spill]] %s3025_s7 }
   0x5   :  { %3046 = sst [smem:[#allocation33_spill]] %s3026_s8 }
   0x6   :  { %3047 = sst [smem:[#allocation34_spill]] %s3027_s9 }
   0x7   :  { %3048 = sst [smem:[#allocation35_spill]] %s3028_s10 }
   0x8   :  { %3049 = sst [smem:[#allocation36_spill]] %s3029_s11 }
   0x9   :  { %3050 = sst [smem:[#allocation37_spill]] %s3030_s12 }
   0xa   :  { %3051 = sst [smem:[#allocation38_spill]] %s3031_s13 }
   0xb   :  { %18 = vsyncpa [#allocation3], 0 }
   0xc   :  { %20 = vsyncpa [#allocation3 + $0x1], 0 }
   0xd   :  { %21 = vsyncpa [#allocation6], 0 }
   0xe   :  { %23 = vsyncpa [#allocation6 + $0x1], 0 }
   0xf   :  { %24 = vsyncpa [#allocation9], 0 }
  0x10   :  { %25 = vsyncpa [#allocation12], 0 }
  0x11   :  { %26 = vsyncpa [#allocation15], 0 }
  0x12   :  { %27 = vsyncpa [#allocation4], 0 }
  0x13   :  { %29 = vsyncpa [#allocation4 + $0x1], 0  ;;  %s2614_s25 = smov 0   ;;  %s2616_s26 = smov 0  }
  0x14   :  { %s2618_s27 = smov 0   ;;  %s2620_s28 = smov 0  }
  0x15   :  { %s2622_s29 = smov 0   ;;  %s2624_s30 = smov 0  }
  0x16 LB: > { %3052 = sst [smem:[#allocation24_spill]] %s2513_s27  ;;  %s2645_s14 = sadd.s32 4294967295, %s2525_s30   ;;  %s2525_s30 = sphi %s2624_s30, %s35_s30   ;;  %s2521_s29 = sphi %s2622_s29, %s3079_s29   ;;  %s2517_s28 = sphi %s2620_s28, %s3078_s28   ;;  %s2513_s27 = sphi %s2618_s27, %s3077_s27   ;;  %s2509_s26 = sphi %s2616_s26, %s3081_s26   ;;  %s2505_s25 = sphi %s2614_s25, %s3080_s25  }
  0x17   : > { %3053 = sst [smem:[#allocation25_spill]] %s2521_s29  ;;  %p1824_p0 = scmp.ge.s32.totalorder %s2525_s30, 1 }
  0x18   : > { %p148_p1 = scmp.eq.s32.totalorder %s2645_s14, 0  ;;  %p380_p2 = scmp.lt.s32.totalorder %s2525_s30, 3 }
  0x19   : > { %s3054_s5 = sld [smem:[#allocation30_spill]]  ;;  %s2527_s19 = smov [#allocation7]  }
  0x1a   : > { %p2653_p3 = pnand %p1824_p0, %p380_p2  ;;  %s393_s20 = sshll.u32 %s2527_s19, 4  ;;  %s394_s20 = int_to_ptr.vmem [resolvable:$true] %s393_s20 }
  0x1b   : > { %p1831_p6 = scmp.ge.s32.totalorder %s2525_s30, 2  ;;  %s3057_s6 = sld [smem:[#allocation31_spill]] }
  0x1c   : > { %p2013_p4 = pneg %p2653_p3  ;;  %s2528_s15 = smov 128  }
  0x1d   : > { %s2529_s16 = smov 8   ;;  %s2530_s19 = smov [#allocation8]  }
  0x1e   : > { %p2661_p5 = pnand %p2013_p4, %p148_p1  ;;  %s3034_s13 = smov 64  }
  0x1f   : > { %s391_s17 = sshll.u32 %s3054_s5, 4  ;;  %s407_s5 = sshll.u32 %s2530_s19, 4  ;;  %s392_s17 = int_to_ptr.hbm [resolvable:$true] %s391_s17  ;;  %s408_s5 = int_to_ptr.vmem [resolvable:$true] %s407_s5 }
  0x20   : > { %2016 = dma.hbm_to_vmem [thread:$0]  (!%p2661_p5), %s392_s17, 256, %s394_s20, [#allocation6], %s2528_s15, %s2528_s15, %s2529_s16  }
  0x21   : > { %s405_s24 = sshll.u32 %s3057_s6, 4  ;;  %s3036_s11 = smov 4   ;;  %s406_s24 = int_to_ptr.hbm [resolvable:$true] %s405_s24 }
  0x22   : > { %2019 = dma.hbm_to_vmem [thread:$0]  (!%p2661_p5), %s406_s24, 256, %s408_s5, [#allocation9], %s3034_s13, %s3034_s13, %s3036_s11  }
  0x23   : > { %s3058_s8 = sld [smem:[#allocation33_spill]]  ;;  %s2533_s12 = smov [#allocation11]  }
  0x24   : > { %s435_s2 = sshll.u32 %s2533_s12, 4  ;;  %s3059_s7 = sld [smem:[#allocation32_spill]]  ;;  %s436_s2 = int_to_ptr.vmem [resolvable:$true] %s435_s2 }
  0x25   : > { %s2534_s5 = smov [#allocation10]   ;;  %s3060_s9 = sld [smem:[#allocation34_spill]] }
  0x26   : > { %s421_s24 = sshll.u32 %s2534_s5, 4  ;;  %s3061_s10 = sld [smem:[#allocation35_spill]]  ;;  %s422_s24 = int_to_ptr.vmem [resolvable:$true] %s421_s24 }
  0x27   : > { %s2535_s20 = smov [#allocation13]   ;;  %s2536_s22 = smov [#allocation14]  }
  0x28   : > { %s449_s5 = sshll.u32 %s2535_s20, 4  ;;  %s47_s23 = sadd.s32 1, %s2521_s29  ;;  %s450_s5 = int_to_ptr.vmem [resolvable:$true] %s449_s5 }
  0x29   : > { %s433_s6 = sshll.u32 %s3058_s8, 4  ;;  %p49_p7 = scmp.ge.s32.totalorder %s47_s23, 2  ;;  %s434_s6 = int_to_ptr.hbm [resolvable:$true] %s433_s6 }
  0x2a   : > { %s419_s19 = sshll.u32 %s3059_s7, 4  ;;  %p141_p8 = scmp.ne.s32.totalorder %s2513_s27, %s2509_s26  ;;  %s420_s19 = int_to_ptr.hbm [resolvable:$true] %s419_s19 }
  0x2b   : > { %2025 = dma.hbm_to_vmem [thread:$0]  (!%p2661_p5), %s434_s6, 256, %s436_s2, [#allocation12], %s3034_s13, %s3034_s13, %s3036_s11  }
  0x2c   : > { %s447_s12 = sshll.u32 %s3060_s9, 4  ;;  %s461_s17 = sshll.u32 %s3061_s10, 4  ;;  %s448_s12 = int_to_ptr.hbm [resolvable:$true] %s447_s12  ;;  %s462_s17 = int_to_ptr.hbm [resolvable:$true] %s461_s17 }
  0x2d   : > { %2022 = dma.hbm_to_vmem [thread:$0]  (!%p2661_p5), %s420_s19, 256, %s422_s24, [#allocation9], %s3034_s13, %s3034_s13, %s3036_s11  }
  0x2e   : > { %2028 = dma.hbm_to_vmem [thread:$0]  (!%p2661_p5), %s448_s12, 256, %s450_s5, [#allocation12], %s3034_s13, %s3034_s13, %s3036_s11  }
  0x2f   : > { %s463_s19 = sshll.u32 %s2536_s22, 4  ;;  %s1823_s24 = sadd.s32 4294967294, %s2525_s30   ;;  %s464_s19 = int_to_ptr.vmem [resolvable:$true] %s463_s19 }
  0x30   : > { %2031 = dma.hbm_to_vmem [thread:$0]  (!%p2661_p5), %s462_s17, 512, %s464_s19, [#allocation15], %s2528_s15, %s2528_s15, %s2529_s16  }
  0x31   : > { %s134_s2 = sadd.s32 1, %s2513_s27  ;;  %p142_p9 = scmp.eq.s32.totalorder %s2525_s30, 0 }
  0x32   : > { %s3083_s23 = smov (%p49_p7, %s47_s23), 0  ;;  %p147_p11 = scmp.ne.s32.totalorder %s2509_s26, %s2505_s25 }
  0x33   : > { %3062 = sst [smem:[#allocation26_spill]] %s3083_s23  ;;  %p2719_p10 = por %p142_p9, %p141_p8 }
  0x34   : > { %s131_s21 = ssub.s32 %s2521_s29, %s3083_s23  ;;  %p367_p12 = scmp.eq.s32.totalorder %s2645_s14, 1 }
  0x35   : > { %p132_p13 = scmp.eq.s32.totalorder %s131_s21, 0  ;;  %p2730_p0 = por %p148_p1, %p147_p11 }
  0x36   : > { %p2734_p2 = por %p367_p12, %p141_p8  ;;  %p373_p4 = scmp.eq.s32.totalorder %s1823_s24, 1 }
  0x37   : > { %s2739_s6 = scalar_select %p132_p13, %s2513_s27, %s134_s2  }
  0x38   : > { %p2741_p5 = por %p373_p4, %p147_p11  ;;  %p2049_p7 = scmp.lt.s32.totalorder %s2525_s30, 2 }
  0x39   : > { %3066 = sst [smem:[#allocation27_spill]] %s2739_s6  ;;  %s509_s20 = sand.u32 1, %s2513_s27  }
  0x3a   : > { %s3067_s17 = scalar_select %p2741_p5, 1, 0 }
  0x3b   : > { %s1959_s5 = sshll.u32 %s2521_s29, 4  ;;  %s1832_s22 = sshll.u32 %s509_s20, 4 }
  0x3c   : > { %3068 = sst [smem:[#allocation28_spill]] %s3067_s17  ;;  %s518_s13 = scalar_lea.hbm %s3021_s3, %s1959_s5 }
  0x3d   : > { %s519_s11 = sshll.u32 %s518_s13, 4  ;;  %s513_s7 = scalar_lea.vmem [#allocation2], %s1832_s22  ;;  %s520_s11 = int_to_ptr.hbm [resolvable:$true] %s519_s11 }
  0x3e   : > { %s521_s8 = sshll.u32 %s513_s7, 4  ;;  %p2033_p8 = pnand %p2049_p7, %p2719_p10  ;;  %s522_s8 = int_to_ptr.vmem [resolvable:$true] %s521_s8 }
  0x3f   : > { %s540_s9 = scalar_lea.hbm %s3022_s4, %s1959_s5  ;;  %s535_s10 = scalar_lea.vmem [#allocation5], %s1832_s22 }
  0x40   : > { %s543_s23 = sshll.u32 %s535_s10, 4  ;;  %s541_s29 = sshll.u32 %s540_s9, 4  ;;  %s542_s29 = int_to_ptr.hbm [resolvable:$true] %s541_s29  ;;  %s544_s23 = int_to_ptr.vmem [resolvable:$true] %s543_s23 }
  0x41   : > { %s510_s6 = scalar_lea.sflag [#allocation3], %s509_s20  ;;  %s3069_s27 = smov 4  }
  0x42   : > { %s3070_s17 = smov 64   ;;  %s531_s13 = sand.u32 1, %s2525_s30  }
  0x43   : > { %2035 = dma.hbm_to_vmem [thread:$0]  (!%p2033_p8), %s520_s11, 256, %s522_s8, %s510_s6, %s3070_s17, %s3070_s17, %s3069_s27  }
  0x44   : > { %s532_s7 = scalar_lea.sflag [#allocation6], %s531_s13  ;;  %555 = sbr.rel (%p2653_p3) target bundleno = 3031 (0xbd7), region = 72 }
  0x45   : > { %2038 = dma.hbm_to_vmem [thread:$0]  (!%p2033_p8), %s542_s29, 256, %s544_s23, %s532_s7, %s3070_s17, %s3070_s17, %s3069_s27  }
  0x46   : > { %s2766_s10 = sand.u32 (!%p2653_p3), 1, %s2509_s26  }
  0x47   : > { %s1839_s9 = sshll.u32 (!%p2653_p3), %s2766_s10, 4  ;;  %s558_s12 = scalar_lea.sflag (!%p2653_p3), [#allocation3], %s2766_s10 }
  0x48   : > { %s2770_s8 = scalar_lea.vmem (!%p2653_p3), [#allocation2], %s1839_s9 }
  0x49   : > { %2476 = dma.done.wait (%p2730_p0), %s558_s12, 256  }
  0x4a   : > { %2478 = vsyncadd (%p2730_p0), %s558_s12, 4294967040  ;;  %s567_s11 = sand.u32 1, %s2645_s14   ;;  %s2777_s29 = scalar_lea.vmem [#allocation5], %s1839_s9 }
  0x4b   : > { %s568_s27 = scalar_lea.sflag [#allocation6], %s567_s11 }
  0x4c   : > { %2480 = dma.done.wait (%p2730_p0), %s568_s27, 256  }
  0x4d   : > { %2482 = vsyncadd (%p2730_p0), %s568_s27, 4294967040 }
  0x4e   : > { %2484 = dma.done.wait (%p148_p1), [#allocation6], 256  }
  0x4f   : > { %2486 = vsyncadd (%p148_p1), [#allocation6], 4294967040 }
  0x50   : > { %2488 = dma.done.wait (%p148_p1), [#allocation9], 512  }
  0x51   : > { %2490 = vsyncadd (%p148_p1), [#allocation9], 4294966784 }
  0x52   : > { %2492 = dma.done.wait (%p148_p1), [#allocation12], 512  }
  0x53   : > { %2494 = vsyncadd (%p148_p1), [#allocation12], 4294966784 }
  0x54   : > { %2496 = dma.done.wait (%p148_p1), [#allocation15], 512  }
  0x55   : > { %2498 = vsyncadd (%p148_p1), [#allocation15], 4294966784  ;;  %p667_p3 = scmp.lt.s32.totalorder %s2517_s28, 1  ;;  %vm688_vm0 = vcmask 261120   ;;  %v2537_v2 = vmov 32.0   ;;  %v1964_v14 = vld [vmem:[#allocation8 + $0x8] sm:$0xff] }
  0x56   : > { %2123 = vrcp.f32 %v2537_v2  ;;  %748 = vmatpush.bf16.msra.mxu0 %v1964_v14  ;;  %v1963_v15 = vld [vmem:[#allocation8] sm:$0xff]  ;;  %vm778_vm2 = vcmask 64512   ;;  %v2827_v26 = vld [vmem:[#allocation7] sm:$0xff]  ;;  %s2538_s19 = smov 104   ;;  %s2539_s21 = smov 120   ;;  %vm918_vm6 = vcmask 1043456  }
  0x57   : > { %s2801_s18 = scalar_select %p667_p3, %s2517_s28, 1  ;;  %v718_v28 = vperm.slane %v2827_v26, 0  ;;  %v720_v31 = vperm.slane %v2827_v26, 1  ;;  %vm1017_vm7 = vcmask 130048   ;;  %vm1019_vm8 = vcmask 195584  }
  0x58   : > { %s2540_s24 = smov 112   ;;  %s3071_s7 = sld [smem:[#allocation29_spill]] }
  0x59   : > { %s1848_s23 = sshll.u32 %s2801_s18, 3  ;;  %s1961_s14 = sshll.u32 %s2801_s18, 4 }
  0x5a   : > { %s673_s17 = scalar_lea.vmem %s3018_s0, %s1848_s23  ;;  %749 = vmatpush.bf16.msra.mxu0 %v1963_v15  ;;  %s2822_s22 = scalar_lea.vmem %s3019_s1, %s1961_s14 }
  0x5b   : > { %v2807_v0 = vld [vmem:[%s673_s17] sm:$0xff]  ;;  %v773_v35 = vld [vmem:[%s2822_s22 + $0xc] sm:$0xf]  ;;  %v772_v43 = vld [vmem:[%s2822_s22 + $0x8] sm:$0xf]  ;;  %s2541_s12 = smov 8  }
  0x5c   : > { %v689_v1 = vsel %vm688_vm0, %v2807_v0, 0.0  ;;  %v2124_v3 = vpop.eup %2123  ;;  %v770_v16 = vld [vmem:[%s2822_s22] sm:$0xf]  ;;  %v840_v36 = vsel %vm778_vm2, %v773_v35, 0  ;;  %v771_v41 = vld [vmem:[%s2822_s22 + $0x4] sm:$0xf] }
  0x5d   : > { %690 = vadd.xlane.f32.xlu0 %v689_v1  ;;  %v693_v4 = vmul.f32 32.0, %v2124_v3  ;;  %vm697_vm1 = vweird.f32 %v2124_v3  ;;  %v783_v18 = vsel %vm778_vm2, %v770_v16, 0  ;;  %v802_v42 = vsel %vm778_vm2, %v771_v41, 0  ;;  %s2542_s11 = smov 24   ;;  %s2543_s27 = smov 16  }
  0x5e   : > { %792 = vmatpush.bf16.xpose.msra.mxu1 %v783_v18  ;;  %849 = vmatpush.bf16.xpose.msrb.mxu0 %v840_v36  ;;  %v821_v44 = vsel %vm778_vm2, %v772_v43, 0  ;;  %s683_s9 = scalar_lea.vmem %s3071_s7, %s1961_s14  ;;  %s3072_s18 = sld [smem:[#allocation37_spill]] }
  0x5f   : > { %v694_v5 = vsub.f32 1.0, %v693_v4  ;;  %811 = vmatpush.bf16.xpose.msra.mxu3 %v802_v42  ;;  %v777_v63 = vld [vmem:[%s683_s9 + $0xc] sm:$0xf]  ;;  %s3073_s14 = sld [smem:[#allocation36_spill]]  ;;  %s1608_s5 = scalar_lea.sflag [#allocation4], %s2766_s10 }
  0x60   : > { %v977_v1 = vsel %vm918_vm6, %v777_v63, 0  ;;  %s3074_s15 = sld [smem:[#allocation38_spill]] }
  0x61   : > { %v695_v6 = vmul.f32 %v2124_v3, %v694_v5  ;;  %v775_v5 = vld [vmem:[%s683_s9 + $0x4] sm:$0xf] }
  0x63   : > { %v696_v7 = vadd.f32 %v2124_v3, %v695_v6  ;;  %v939_v6 = vsel %vm918_vm6, %v775_v5, 0 }
  0x64   : > { %948 = vmatpush.bf16.msra.mxu2 %v939_v6  ;;  %v1966_v6 = vld [vmem:[#allocation10 + $0x8] sm:$0xff] }
  0x65   : > { %v2811_v8 = vsel %vm697_vm1, %v2124_v3, %v696_v7 }
  0x67   : > { %830 = vmatpush.bf16.xpose.msrb.mxu3 %v821_v44 }
  0xd0   : > { %v691_v9 = vpop.xlane.xlu0 %690 }
  0xd1   : > { %v699_v10 = vmul.f32 %v2811_v8, %v691_v9 }
  0xd3   : > { %v700_v11 = vsub.f32 %v2807_v0, %v699_v10  ;;  %v776_v10 = vld [vmem:[%s683_s9 + $0x8] sm:$0xf] }
  0xd5   : > { %v701_v12 = vmul.f32 %v700_v11, %v700_v11 }
  0xd7   : > { %v702_v13 = vsel %vm688_vm0, %v701_v12, 0.0  ;;  %v774_v12 = vld [vmem:[%s683_s9] sm:$0xf] }
  0xd8   : > { %703 = vadd.xlane.f32.xlu0 %v702_v13  ;;  %v920_v14 = vsel %vm918_vm6, %v774_v12, 0 }
  0xd9   : > { %929 = vmatpush.bf16.msrb.mxu1 %v920_v14 }
 0x14b   : > { %v704_v17 = vpop.xlane.xlu0 %703 }
 0x14c   : > { %v705_v19 = vmul.f32 %v704_v17, %v2811_v8 }
 0x14e   : > { %v706_v20 = vadd.f32 1e-05, %v705_v19 }
 0x150   : > { %2125 = vrsqrt.f32 %v706_v20  ;;  %vm713_vm4 = vweird.f32 %v706_v20 }
 0x156   : > { %v2126_v21 = vpop.eup %2125 }
 0x157   : > { %v708_v22 = vmul.f32 %v2126_v21, %v706_v20  ;;  %vm714_vm3 = vweird.f32 %v2126_v21 }
 0x158   : > { %vm715_vm5 = vmor %vm713_vm4, %vm714_vm3 }
 0x159   : > { %v709_v23 = vmul.f32 %v2126_v21, %v708_v22 }
 0x15b   : > { %v710_v24 = vmul.f32 0.5, %v709_v23 }
 0x15d   : > { %v711_v25 = vsub.f32 1.5, %v710_v24 }
 0x15f   : > { %v712_v27 = vmul.f32 %v2126_v21, %v711_v25 }
 0x161   : > { %v716_v29 = vsel %vm715_vm5, %v2126_v21, %v712_v27 }
 0x162   : > { %v717_v30 = vmul.f32 %v716_v29, %v700_v11  ;;  %v958_v11 = vsel %vm918_vm6, %v776_v10, 0 }
 0x164   : > { %v719_v32 = vmul.f32 %v718_v28, %v717_v30 }
 0x166   : > { %v721_v33 = vadd.f32 %v720_v31, %v719_v32 }
 0x168   : > { %v722_v34 = vpack.c.bf16 %v721_v33, %v721_v33 }
 0x16a   : > { %1861 = vmatmul.msk.bf16.vlgmr.msra.gmra.mxu0 %vm688_vm0, %v722_v34 }
 0x16b   : > { %986 = vmatpush.bf16.msra.mxu0 %v977_v1 }
 0x1e7   : > { %v751_v37 = vpop.f32.mrf.mxu0 }
 0x1e8   : > { %v755_v38 = vmul.f32 0.35355338, %v751_v37 }
 0x1ea   : > { %763 = vrot.lane.b32.xlu2 %v755_v38, %s2538_s19  ;;  %757 = vrot.lane.b32.xlu1 %v755_v38, %s2539_s21  ;;  %v766_v39 = vpack.c.bf16 %v755_v38, %v755_v38 }
 0x1ec   : > { %1862 = vmatmul.msk.bf16.vlgmr.msra.gmra.mxu1 %vm778_vm2, %v766_v39 }
 0x1ed   : > { %1048 = vmatpush.bf16.msra.mxu1 %v1966_v6 }
 0x1ef   : > { %v753_v40 = vpop.f32.mrf.mxu0 }
 0x1f2   : > { %760 = vrot.lane.b32.xlu1 %v755_v38, %s2540_s24 }
 0x244   : > { %v764_v45 = vpop.permute.xlu2 %763 }
 0x245   : > { %v769_v46 = vpack.c.bf16 %v764_v45, %v764_v45 }
 0x247   : > { %1865 = vmatmul.msk.bf16.vlgmr.msrb.gmra.mxu0 %vm778_vm2, %v769_v46 }
 0x25c   : > { %v758_v47 = vpop.permute.xlu1 %757 }
 0x25d   : > { %v767_v48 = vpack.c.bf16 %v758_v47, %v758_v47 }
 0x25f   : > { %1863 = vmatmul.msk.bf16.vlgmr.msra.gmra.mxu3 %vm778_vm2, %v767_v48 }
 0x260   : > { %967 = vmatpush.bf16.msra.mxu3 %v958_v11 }
 0x264   : > { %v761_v50 = vpop.permute.xlu1 %760 }
 0x265   : > { %v768_v51 = vpack.c.bf16 %v761_v50, %v761_v50 }
 0x269   : > { %v794_v49 = vpop.f32.mrf.mxu1 }
 0x26a   : > { %v855_v62 = vsel %vm778_vm2, %v794_v49, -inf }
 0x26f   : > { %1864 = vmatmul.msk.bf16.vlgmr.msrb.gmra.mxu3 %vm778_vm2, %v768_v51 }
 0x271   : > { %v796_v52 = vpop.f32.mrf.mxu1 }
 0x2c4   : > { %v851_v53 = vpop.f32.mrf.mxu0 }
 0x2c5   : > { %v864_v54 = vsel %vm778_vm2, %v851_v53, -inf }
 0x2c6   : > { %865 = vmax.xlane.f32.xlu1 %v864_v54 }
 0x2cc   : > { %v853_v55 = vpop.f32.mrf.mxu0 }
 0x2e2   : > { %v813_v56 = vpop.f32.mrf.mxu3 }
 0x2e3   : > { %v858_v57 = vsel %vm778_vm2, %v813_v56, -inf }
 0x2e4   : > { %859 = vmax.xlane.f32.xlu2 %v858_v57 }
 0x2ea   : > { %v815_v58 = vpop.f32.mrf.mxu3 }
 0x2f2   : > { %v832_v59 = vpop.f32.mrf.mxu3 }
 0x2f3   : > { %v861_v60 = vsel %vm778_vm2, %v832_v59, -inf }
 0x2f4   : > { %862 = vmax.xlane.f32.xlu0 %v861_v60 }
 0x2fa   : > { %v834_v61 = vpop.f32.mrf.mxu3 }
 0x2fc   : > { %856 = vmax.xlane.f32.xlu0 %v855_v62 }
 0x339   : > { %v866_v2 = vpop.xlane.xlu1 %865 }
 0x33a   : > { %v882_v3 = vsub.f32 %v851_v53, %v866_v2  ;;  %v870_v39 = vsub.f32 -inf, %v866_v2 }
 0x33c   : > { %v889_v4 = vmul.f32 1.442695, %v882_v3  ;;  %v877_v43 = vmul.f32 1.442695, %v870_v39 }
 0x33e   : > { %2127 = vpow2.f32 %v889_v4 }
 0x344   : > { %v2128_v7 = vpop.eup %2127 }
 0x345   : > { %v914_v9 = vpack.c.bf16 %v2128_v7, %v2128_v7  ;;  %v904_v32 = vsel %vm778_vm2, %v2128_v7, 0.0  ;;  %v1965_v7 = vld [vmem:[#allocation10] sm:$0xff] }
 0x346   : > { %1049 = vmatpush.bf16.msra.mxu1 %v1965_v7 }
 0x347   : > { %1869 = vmatmul.msk.bf16.vlgmr.msra.gmra.mxu0 %vm778_vm2, %v914_v9 }
 0x357   : > { %v860_v13 = vpop.xlane.xlu2 %859 }
 0x358   : > { %v880_v15 = vsub.f32 %v813_v56, %v860_v13  ;;  %v868_v36 = vsub.f32 -inf, %v860_v13 }
 0x35a   : > { %v885_v16 = vmul.f32 1.442695, %v880_v15  ;;  %v873_v37 = vmul.f32 1.442695, %v868_v36 }
 0x35c   : > { %2129 = vpow2.f32 %v885_v16 }
 0x362   : > { %v2130_v17 = vpop.eup %2129 }
 0x363   : > { %v898_v18 = vsel %vm778_vm2, %v2130_v17, 0.0  ;;  %v912_v19 = vpack.c.bf16 %v2130_v17, %v2130_v17 }
 0x364   : > { %899 = vadd.xlane.f32.xlu0 %v898_v18 }
 0x365   : > { %1867 = vmatmul.msk.bf16.vlgmr.msra.gmra.mxu2 %vm778_vm2, %v912_v19 }
 0x367   : > { %v863_v20 = vpop.xlane.xlu0 %862 }
 0x368   : > { %v881_v21 = vsub.f32 %v832_v59, %v863_v20  ;;  %v869_v40 = vsub.f32 -inf, %v863_v20 }
 0x36a   : > { %v887_v22 = vmul.f32 1.442695, %v881_v21  ;;  %v875_v45 = vmul.f32 1.442695, %v869_v40 }
 0x36c   : > { %2131 = vpow2.f32 %v887_v22 }
 0x36f   : > { %v2861_v23 = vpop.xlane.xlu0 %856 }
 0x370   : > { %v879_v24 = vsub.f32 %v794_v49, %v2861_v23  ;;  %v867_v9 = vsub.f32 -inf, %v2861_v23 }
 0x372   : > { %v883_v25 = vmul.f32 1.442695, %v879_v24  ;;  %v2132_v27 = vpop.eup %2131  ;;  %v871_v10 = vmul.f32 1.442695, %v867_v9 }
 0x373   : > { %v913_v28 = vpack.c.bf16 %v2132_v27, %v2132_v27  ;;  %v901_v29 = vsel %vm778_vm2, %v2132_v27, 0.0 }
 0x374   : > { %2133 = vpow2.f32 %v883_v25  ;;  %902 = vadd.xlane.f32.xlu0 %v901_v29  ;;  %v1026_v25 = vperm.slane %v2827_v26, 6 }
 0x375   : > { %1868 = vmatmul.msk.bf16.vlgmr.msra.gmra.mxu3 %vm778_vm2, %v913_v28  ;;  %2135 = vpow2.f32 %v873_v37  ;;  %v1968_v37 = vld [vmem:[#allocation11 + $0x8] sm:$0xff] }
 0x376   : > { %2137 = vpow2.f32 %v877_v43  ;;  %1108 = vmatpush.bf16.msrb.mxu2 %v1968_v37 }
 0x37a   : > { %v2134_v30 = vpop.eup %2133 }
 0x37b   : > { %v895_v31 = vsel %vm778_vm2, %v2134_v30, 0.0  ;;  %v911_v33 = vpack.c.bf16 %v2134_v30, %v2134_v30  ;;  %v2136_v38 = vpop.eup %2135 }
 0x37c   : > { %896 = vadd.xlane.f32.xlu2 %v895_v31  ;;  %905 = vadd.xlane.f32.xlu0 %v904_v32  ;;  %v892_v42 = vmul.f32 0.0, %v2136_v38  ;;  %v2138_v48 = vpop.eup %2137  ;;  %v1967_v38 = vld [vmem:[#allocation11] sm:$0xff] }
 0x37d   : > { %1866 = vmatmul.msk.bf16.vlgmr.msrb.gmra.mxu1 %vm778_vm2, %v911_v33  ;;  %v894_v53 = vmul.f32 0.0, %v2138_v48  ;;  %1109 = vmatpush.bf16.msrb.mxu2 %v1967_v38 }
 0x3c4   : > { %v988_v34 = vpop.f32.mrf.mxu0 }
 0x3c5   : > { %v995_v59 = vadd.f32 %v988_v34, %v894_v53 }
 0x3cc   : > { %v990_v35 = vpop.f32.mrf.mxu0 }
 0x3d7   : > { %v900_v41 = vpop.xlane.xlu0 %899 }
 0x3d8   : > { %v908_v44 = vadd.f32 %v900_v41, %v892_v42 }
 0x3da   : > { %2139 = vrcp.f32 %v908_v44 }
 0x3db   : > { %2141 = vpow2.f32 %v875_v45 }
 0x3e0   : > { %v2140_v50 = vpop.eup %2139 }
 0x3e1   : > { %v2142_v51 = vpop.eup %2141 }
 0x3e2   : > { %v893_v54 = vmul.f32 0.0, %v2142_v51 }
 0x3e7   : > { %v903_v46 = vpop.xlane.xlu0 %902 }
 0x3e8   : > { %v950_v47 = vpop.f32.mrf.mxu2  ;;  %v909_v56 = vadd.f32 %v903_v46, %v893_v54 }
 0x3e9   : > { %v993_v49 = vadd.f32 %v950_v47, %v892_v42 }
 0x3eb   : > { %v1001_v52 = vmul.f32 %v2140_v50, %v993_v49  ;;  %v1078_v49 = vperm.slane %v2827_v26, 2 }
 0x3ed   : > { %1005 = vrot.lane.b32.xlu0 %v1001_v52, %s2541_s12  ;;  %v1080_v52 = vperm.slane %v2827_v26, 3 }
 0x3ef   : > { %v906_v55 = vpop.xlane.xlu0 %905  ;;  %v897_v12 = vpop.xlane.xlu2 %896 }
 0x3f0   : > { %v910_v57 = vadd.f32 %v906_v55, %v894_v53  ;;  %v952_v58 = vpop.f32.mrf.mxu2 }
 0x3f2   : > { %2143 = vrcp.f32 %v910_v57  ;;  %v1131_v57 = vld [vmem:[%s2770_s8 + $0x4] sm:$0xf] }
 0x3f3   : > { %2145 = vrcp.f32 %v909_v56  ;;  %v1133_v56 = vld [vmem:[%s2770_s8 + $0xc] sm:$0xf] }
 0x3f4   : > { %2147 = vpow2.f32 %v871_v10  ;;  %v1199_v58 = vsel %vm778_vm2, %v1133_v56, 0 }
 0x3f5   : > { %1208 = vmatpush.bf16.xpose.msra.mxu2 %v1199_v58 }
 0x3f8   : > { %v969_v60 = vpop.f32.mrf.mxu3  ;;  %v2144_v61 = vpop.eup %2143 }
 0x3f9   : > { %v994_v62 = vadd.f32 %v969_v60, %v893_v54  ;;  %v2146_v63 = vpop.eup %2145  ;;  %v1003_v2 = vmul.f32 %v2144_v61, %v995_v59  ;;  %v1161_v59 = vsel %vm778_vm2, %v1131_v57, 0 }
 0x3fa   : > { %v931_v1 = vpop.f32.mrf.mxu1  ;;  %v2148_v11 = vpop.eup %2147  ;;  %1170 = vmatpush.bf16.xpose.msrb.mxu0 %v1161_v59 }
 0x3fb   : > { %v1002_v3 = vmul.f32 %v2146_v63, %v994_v62  ;;  %1013 = vrot.lane.b32.xlu1 %v1003_v2, %s2542_s11  ;;  %v891_v13 = vmul.f32 0.0, %v2148_v11 }
 0x3fd   : > { %1009 = vrot.lane.b32.xlu2 %v1002_v3, %s2543_s27  ;;  %v907_v14 = vadd.f32 %v897_v12, %v891_v13  ;;  %v992_v15 = vadd.f32 %v931_v1, %v891_v13  ;;  %v1132_v1 = vld [vmem:[%s2770_s8 + $0x8] sm:$0xf] }
 0x3fe   : > { %v1180_v2 = vsel %vm778_vm2, %v1132_v1, 0 }
 0x3ff   : > { %2149 = vrcp.f32 %v907_v14  ;;  %1189 = vmatpush.bf16.xpose.msrb.mxu1 %v1180_v2 }
 0x400   : > { %v971_v4 = vpop.f32.mrf.mxu3 }
 0x402   : > { %v933_v5 = vpop.f32.mrf.mxu1 }
 0x405   : > { %v2150_v16 = vpop.eup %2149 }
 0x406   : > { %v1000_v18 = vmul.f32 %v2150_v16, %v992_v15 }
 0x457   : > { %v1010_v20 = vpop.permute.xlu2 %1009 }
 0x45f   : > { %v1006_v17 = vpop.permute.xlu0 %1005 }
 0x460   : > { %v1016_v19 = vsel %vm778_vm2, %v1000_v18, %v1006_v17 }
 0x461   : > { %v1018_v21 = vsel %vm1017_vm7, %v1016_v19, %v1010_v20 }
 0x46d   : > { %v1014_v22 = vpop.permute.xlu1 %1013 }
 0x46e   : > { %v1020_v23 = vsel %vm1019_vm8, %v1018_v21, %v1014_v22  ;;  %v1137_v22 = vld [vmem:[%s2777_s29 + $0xc] sm:$0xf] }
 0x46f   : > { %v1021_v24 = vpack.c.bf16 %v1020_v23, %v1020_v23  ;;  %v1335_v23 = vsel %vm918_vm6, %v1137_v22, 0 }
 0x471   : > { %1878 = vmatmul.msk.bf16.vlgmr.msra.gmra.mxu1 %vm688_vm0, %v1021_v24  ;;  %v1135_v24 = vld [vmem:[%s2777_s29 + $0x4] sm:$0xf] }
 0x4ee   : > { %v1051_v27 = vpop.f32.mrf.mxu1 }
 0x4ef   : > { %v1052_v28 = vadd.f32 %v1051_v27, %v1026_v25  ;;  %v1136_v25 = vld [vmem:[%s2777_s29 + $0x8] sm:$0xf]  ;;  %v1297_v27 = vsel %vm918_vm6, %v1135_v24, 0 }
 0x4f0   : > { %1306 = vmatpush.bf16.msra.mxu0 %v1297_v27 }
 0x4f1   : > { %v2879_v29 = vadd.f32 %v1052_v28, %v2807_v0  ;;  %v1130_v0 = vld [vmem:[%s2770_s8] sm:$0xf]  ;;  %v1316_v28 = vsel %vm918_vm6, %v1136_v25, 0  ;;  %s1956_s8 = sshll.u32 %s2517_s28, 3 }
 0x4f2   : > { %v1142_v40 = vsel %vm778_vm2, %v1130_v0, 0  ;;  %1325 = vmatpush.bf16.msra.mxu1 %v1316_v28  ;;  %s1619_s6 = scalar_lea.hbm %s3074_s15, %s1956_s8 }
 0x4f3   : > { %v1056_v30 = vsel %vm688_vm0, %v2879_v29, 0.0  ;;  %1151 = vmatpush.bf16.xpose.msrb.mxu3 %v1142_v40  ;;  %s1623_s20 = sshll.u32 %s1619_s6, 4  ;;  %s1624_s20 = int_to_ptr.hbm [resolvable:$true] %s1623_s20 }
 0x4f4   : > { %1057 = vadd.xlane.f32.xlu0 %v1056_v30  ;;  %v1134_v30 = vld [vmem:[%s2777_s29] sm:$0xf]  ;;  %s2437_s22 = sshra.s32 %s1624_s20, 4  ;;  %s2438_s22 = int_to_ptr.hbm [resolvable:$true] %s2437_s22 }
 0x4f5   : > { %s2439_s28 = scalar_lea.hbm %s2438_s22, 8  ;;  %p2444_p11 = scmp.lt.s32.totalorder %s2438_s22, %s3074_s15 }
 0x4f6   : > { %v1053_v31 = vpop.f32.mrf.mxu1  ;;  %p2440_p1 = scmp.ne.s32.totalorder %s2438_s22, %s2439_s28 }
 0x4f7   : > { %v1278_v31 = vsel %vm918_vm6, %v1134_v30, 0  ;;  %v1970_v30 = vld [vmem:[#allocation13 + $0x8] sm:$0xff] }
 0x4f8   : > { %p2441_p9 = pnand %p2440_p1, %p2734_p2 }
 0x4fa   : > { %p2442_p10 = pneg %p2441_p9 }
 0x4fb   : > { %1287 = vmatpush.bf16.msra.mxu3 %v1278_v31  ;;  %v1969_v31 = vld [vmem:[#allocation13] sm:$0xff] }
 0x567   : > { %v1058_v32 = vpop.xlane.xlu0 %1057 }
 0x568   : > { %v1059_v33 = vmul.f32 %v1058_v32, %v2811_v8 }
 0x56a   : > { %v1060_v34 = vsub.f32 %v2879_v29, %v1059_v33 }
 0x56c   : > { %v1061_v35 = vmul.f32 %v1060_v34, %v1060_v34 }
 0x56e   : > { %v1062_v36 = vsel %vm688_vm0, %v1061_v35, 0.0 }
 0x56f   : > { %1063 = vadd.xlane.f32.xlu2 %v1062_v36 }
 0x5e2   : > { %v1064_v39 = vpop.xlane.xlu2 %1063 }
 0x5e3   : > { %v1065_v41 = vmul.f32 %v1064_v39, %v2811_v8 }
 0x5e5   : > { %v1066_v42 = vadd.f32 1e-05, %v1065_v41 }
 0x5e7   : > { %2151 = vrsqrt.f32 %v1066_v42  ;;  %vm1073_vm10 = vweird.f32 %v1066_v42 }
 0x5ed   : > { %v2152_v43 = vpop.eup %2151 }
 0x5ee   : > { %v1068_v44 = vmul.f32 %v2152_v43, %v1066_v42  ;;  %vm1074_vm9 = vweird.f32 %v2152_v43 }
 0x5ef   : > { %vm1075_vm11 = vmor %vm1073_vm10, %vm1074_vm9 }
 0x5f0   : > { %v1069_v45 = vmul.f32 %v2152_v43, %v1068_v44 }
 0x5f2   : > { %v1070_v46 = vmul.f32 0.5, %v1069_v45 }
 0x5f4   : > { %v1071_v47 = vsub.f32 1.5, %v1070_v46 }
 0x5f6   : > { %v1072_v48 = vmul.f32 %v2152_v43, %v1071_v47 }
 0x5f8   : > { %v1076_v50 = vsel %vm1075_vm11, %v2152_v43, %v1072_v48 }
 0x5f9   : > { %v1077_v51 = vmul.f32 %v1076_v50, %v1060_v34 }
 0x5fb   : > { %v1079_v53 = vmul.f32 %v1078_v49, %v1077_v51 }
 0x5fd   : > { %v1081_v54 = vadd.f32 %v1080_v52, %v1079_v53 }
 0x5ff   : > { %v1082_v55 = vpack.c.bf16 %v1081_v54, %v1081_v54 }
 0x601   : > { %1887 = vmatmul.msk.bf16.vlgmr.msrb.gmra.mxu2 %vm688_vm0, %v1082_v55 }
 0x602   : > { %1344 = vmatpush.bf16.msrb.mxu2 %v1335_v23 }
 0x684   : > { %v1111_v60 = vpop.f32.mrf.mxu2 }
 0x685   : > { %v1115_v61 = vmul.f32 0.35355338, %v1111_v60 }
 0x687   : > { %v1126_v62 = vpack.c.bf16 %v1115_v61, %v1115_v61  ;;  %1123 = vrot.lane.b32.xlu1 %v1115_v61, %s2538_s19 }
 0x689   : > { %1888 = vmatmul.msk.bf16.vlgmr.msrb.gmra.mxu3 %vm778_vm2, %v1126_v62 }
 0x68a   : > { %1404 = vmatpush.bf16.msrb.mxu3 %v1970_v30  ;;  %v1979_v30 = vld [vmem:[%s3072_s18 + $0x20] sm:$0xff] }
 0x68c   : > { %v1113_v63 = vpop.f32.mrf.mxu2 }
 0x68e   : > { %1405 = vmatpush.bf16.msrb.mxu3 %v1969_v31 }
 0x68f   : > { %1117 = vrot.lane.b32.xlu1 %v1115_v61, %s2539_s21 }
 0x697   : > { %1120 = vrot.lane.b32.xlu1 %v1115_v61, %s2540_s24  ;;  %s2443_s24 = scalar_lea.hbm %s3074_s15, 16 }
 0x698   : > { %p2445_p12 = scmp.lt.s32.totalorder %s2443_s24, %s2439_s28 }
 0x69a   : > { %p2446_p13 = por %p2445_p12, %p2444_p11 }
 0x69c   : > { %p2447_p0 = pnand %p2446_p13, %p2442_p10 }
 0x6f9   : > { %v1124_v3 = vpop.permute.xlu1 %1123 }
 0x6fa   : > { %v1129_v4 = vpack.c.bf16 %v1124_v3, %v1124_v3 }
 0x6fc   : > { %1891 = vmatmul.msk.bf16.vlgmr.msra.gmra.mxu2 %vm778_vm2, %v1129_v4 }
 0x701   : > { %v1118_v5 = vpop.permute.xlu1 %1117 }
 0x702   : > { %v1127_v6 = vpack.c.bf16 %v1118_v5, %v1118_v5 }
 0x704   : > { %1889 = vmatmul.msk.bf16.vlgmr.msrb.gmra.mxu0 %vm778_vm2, %v1127_v6 }
 0x709   : > { %v1121_v7 = vpop.permute.xlu1 %1120 }
 0x70a   : > { %v1128_v9 = vpack.c.bf16 %v1121_v7, %v1121_v7 }
 0x70c   : > { %v1153_v10 = vpop.f32.mrf.mxu3  ;;  %1890 = vmatmul.msk.bf16.vlgmr.msrb.gmra.mxu1 %vm778_vm2, %v1128_v9 }
 0x70d   : > { %v1214_v20 = vsel %vm778_vm2, %v1153_v10, -inf }
 0x714   : > { %v1155_v11 = vpop.f32.mrf.mxu3 }
 0x77f   : > { %v1210_v12 = vpop.f32.mrf.mxu2 }
 0x780   : > { %v1223_v13 = vsel %vm778_vm2, %v1210_v12, -inf }
 0x781   : > { %1224 = vmax.xlane.f32.xlu1 %v1223_v13  ;;  %v1172_v14 = vpop.f32.mrf.mxu0 }
 0x782   : > { %v1217_v15 = vsel %vm778_vm2, %v1172_v14, -inf }
 0x783   : > { %1218 = vmax.xlane.f32.xlu0 %v1217_v15 }
 0x787   : > { %v1212_v16 = vpop.f32.mrf.mxu2 }
 0x789   : > { %v1174_v17 = vpop.f32.mrf.mxu0  ;;  %v1191_v18 = vpop.f32.mrf.mxu1 }
 0x78a   : > { %v1220_v19 = vsel %vm778_vm2, %v1191_v18, -inf }
 0x78b   : > { %1221 = vmax.xlane.f32.xlu2 %v1220_v19  ;;  %1215 = vmax.xlane.f32.xlu0 %v1214_v20 }
 0x791   : > { %v1193_v21 = vpop.f32.mrf.mxu1 }
 0x7f4   : > { %v1225_v32 = vpop.xlane.xlu1 %1224 }
 0x7f5   : > { %v1241_v33 = vsub.f32 %v1210_v12, %v1225_v32  ;;  %v1229_v57 = vsub.f32 -inf, %v1225_v32 }
 0x7f6   : > { %v1219_v34 = vpop.xlane.xlu0 %1218 }
 0x7f7   : > { %v1248_v35 = vmul.f32 1.442695, %v1241_v33  ;;  %v1239_v36 = vsub.f32 %v1172_v14, %v1219_v34  ;;  %v1227_v55 = vsub.f32 -inf, %v1219_v34  ;;  %v1236_v59 = vmul.f32 1.442695, %v1229_v57 }
 0x7f9   : > { %v1244_v37 = vmul.f32 1.442695, %v1239_v36  ;;  %2153 = vpow2.f32 %v1248_v35  ;;  %v1232_v56 = vmul.f32 1.442695, %v1227_v55 }
 0x7fb   : > { %2155 = vpow2.f32 %v1244_v37 }
 0x7fe   : > { %v1222_v38 = vpop.xlane.xlu2 %1221  ;;  %v2917_v0 = vpop.xlane.xlu0 %1215 }
 0x7ff   : > { %v1240_v39 = vsub.f32 %v1191_v18, %v1222_v38  ;;  %v1238_v40 = vsub.f32 %v1153_v10, %v2917_v0  ;;  %v2154_v41 = vpop.eup %2153  ;;  %v1228_v58 = vsub.f32 -inf, %v1222_v38  ;;  %v1226_v32 = vsub.f32 -inf, %v2917_v0 }
 0x800   : > { %v1273_v42 = vpack.c.bf16 %v2154_v41, %v2154_v41  ;;  %v1263_v51 = vsel %vm778_vm2, %v2154_v41, 0.0 }
 0x801   : > { %v1246_v43 = vmul.f32 1.442695, %v1240_v39  ;;  %v2156_v44 = vpop.eup %2155  ;;  %v1242_v45 = vmul.f32 1.442695, %v1238_v40  ;;  %v1234_v60 = vmul.f32 1.442695, %v1228_v58 }
 0x802   : > { %v1271_v46 = vpack.c.bf16 %v2156_v44, %v2156_v44  ;;  %1895 = vmatmul.msk.bf16.vlgmr.msrb.gmra.mxu2 %vm778_vm2, %v1273_v42  ;;  %v1257_v47 = vsel %vm778_vm2, %v2156_v44, 0.0  ;;  %v1230_v33 = vmul.f32 1.442695, %v1226_v32  ;;  %v1973_v58 = vld [vmem:[#allocation14 + $0x14] sm:$0xf] }
 0x803   : > { %2157 = vpow2.f32 %v1246_v43  ;;  %1258 = vadd.xlane.f32.xlu2 %v1257_v47  ;;  %v1382_v47 = vperm.slane %v2827_v26, 7 }
 0x804   : > { %1893 = vmatmul.msk.bf16.vlgmr.msra.gmra.mxu0 %vm778_vm2, %v1271_v46  ;;  %2159 = vpow2.f32 %v1242_v45 }
 0x805   : > { %2161 = vpow2.f32 %v1232_v56 }
 0x806   : > { %2163 = vpow2.f32 %v1236_v59  ;;  %v1917_v59 = vld [vmem:[#allocation14 + $0x18] sm:$0xf0] }
 0x807   : > { %2165 = vpow2.f32 %v1234_v60  ;;  %v1915_v60 = vld [vmem:[#allocation14 + $0x10] sm:$0xf] }
 0x809   : > { %v2158_v48 = vpop.eup %2157 }
 0x80a   : > { %v1272_v49 = vpack.c.bf16 %v2158_v48, %v2158_v48  ;;  %v1260_v50 = vsel %vm778_vm2, %v2158_v48, 0.0  ;;  %v2160_v52 = vpop.eup %2159 }
 0x80b   : > { %1261 = vadd.xlane.f32.xlu0 %v1260_v50  ;;  %1264 = vadd.xlane.f32.xlu2 %v1263_v51  ;;  %v1270_v53 = vpack.c.bf16 %v2160_v52, %v2160_v52  ;;  %v1254_v54 = vsel %vm778_vm2, %v2160_v52, 0.0  ;;  %v2162_v61 = vpop.eup %2161 }
 0x80c   : > { %1894 = vmatmul.msk.bf16.vlgmr.msra.gmra.mxu1 %vm778_vm2, %v1272_v49  ;;  %v1251_v63 = vmul.f32 0.0, %v2162_v61  ;;  %v2164_v2 = vpop.eup %2163  ;;  %v1920_v61 = vor.u32 %v1973_v58, %v1917_v59 }
 0x80d   : > { %1892 = vmatmul.msk.bf16.vlgmr.msra.gmra.mxu3 %vm778_vm2, %v1270_v53  ;;  %v2166_v3 = vpop.eup %2165  ;;  %v1253_v4 = vmul.f32 0.0, %v2164_v2  ;;  %v1907_v2 = vld [vmem:[#allocation14] sm:$0xf] }
 0x80e   : > { %v1252_v9 = vmul.f32 0.0, %v2166_v3  ;;  %1491 = vmatpush.bf16.msrb.mxu1 %v1920_v61 }
 0x813   : > { %1255 = vadd.xlane.f32.xlu0 %v1254_v54 }
 0x876   : > { %v1259_v62 = vpop.xlane.xlu2 %1258 }
 0x877   : > { %v1267_v1 = vadd.f32 %v1259_v62, %v1251_v63  ;;  %v1971_v62 = vld [vmem:[#allocation14 + $0x4] sm:$0xf] }
 0x879   : > { %2167 = vrcp.f32 %v1267_v1 }
 0x87e   : > { %v1265_v5 = vpop.xlane.xlu2 %1264  ;;  %v1262_v6 = vpop.xlane.xlu0 %1261 }
 0x87f   : > { %v1269_v7 = vadd.f32 %v1265_v5, %v1253_v4  ;;  %v1268_v10 = vadd.f32 %v1262_v6, %v1252_v9  ;;  %v2168_v13 = vpop.eup %2167 }
 0x881   : > { %2169 = vrcp.f32 %v1269_v7  ;;  %v1308_v11 = vpop.f32.mrf.mxu0 }
 0x882   : > { %v1351_v12 = vadd.f32 %v1308_v11, %v1251_v63  ;;  %2171 = vrcp.f32 %v1268_v10  ;;  %v1909_v63 = vld [vmem:[#allocation14 + $0x8] sm:$0xf0] }
 0x883   : > { %2173 = vpow2.f32 %v1230_v33  ;;  %v1912_v3 = vor.u32 %v1971_v62, %v1909_v63  ;;  %v1978_v33 = vld [vmem:[%s3072_s18 + $0x18] sm:$0xff] }
 0x884   : > { %v1359_v14 = vmul.f32 %v2168_v13, %v1351_v12 }
 0x885   : > { %v1346_v15 = vpop.f32.mrf.mxu2  ;;  %1492 = vmatpush.bf16.msrb.mxu1 %v1912_v3  ;;  %v2122_v3 = vld [vmem:[#allocation7 + $0x8] ss:$0 sm:$0xff] }
 0x886   : > { %v1353_v16 = vadd.f32 %v1346_v15, %v1253_v4  ;;  %1363 = vrot.lane.b32.xlu2 %v1359_v14, %s2541_s12  ;;  %v1256_v35 = vpop.xlane.xlu0 %1255  ;;  %v1972_v4 = vld [vmem:[#allocation14 + $0x4] sm:$0xf0] }
 0x887   : > { %v2170_v17 = vpop.eup %2169  ;;  %v1908_v5 = vor.u32 %v1972_v4, %v1907_v2 }
 0x888   : > { %v1361_v18 = vmul.f32 %v2170_v17, %v1353_v16  ;;  %v2172_v22 = vpop.eup %2171  ;;  %v1434_v16 = vperm.slane %v2827_v26, 4 }
 0x889   : > { %v1310_v19 = vpop.f32.mrf.mxu0  ;;  %v1327_v20 = vpop.f32.mrf.mxu1 }
 0x88a   : > { %v1352_v21 = vadd.f32 %v1327_v20, %v1252_v9  ;;  %1371 = vrot.lane.b32.xlu0 %v1361_v18, %s2542_s11  ;;  %v2174_v34 = vpop.eup %2173  ;;  %v1436_v19 = vperm.slane %v2827_v26, 5  ;;  %v1443_v26 = vld [vmem:[%s3073_s14] sm:$0x3] }
 0x88b   : > { %v1250_v36 = vmul.f32 0.0, %v2174_v34  ;;  %v1445_v59 = vperm.slane %v1443_v26, 0 }
 0x88c   : > { %v1360_v23 = vmul.f32 %v2172_v22, %v1352_v21  ;;  %v1982_v22 = vld [vmem:[%s3072_s18 + $0x38] sm:$0xff] }
 0x88d   : > { %v1348_v24 = vpop.f32.mrf.mxu2  ;;  %v1266_v37 = vadd.f32 %v1256_v35, %v1250_v36  ;;  %1590 = vmatpush.bf16.msra.mxu2 %v1982_v22 }
 0x88e   : > { %1367 = vrot.lane.b32.xlu1 %v1360_v23, %s2543_s27  ;;  %v1981_v23 = vld [vmem:[%s3072_s18 + $0x30] sm:$0xff]  ;;  %v1980_v24 = vld [vmem:[%s3072_s18 + $0x28] sm:$0xff]  ;;  %s1847_s27 = sshll.u32 %s2766_s10, 3 }
 0x88f   : > { %2175 = vrcp.f32 %v1266_v37  ;;  %s666_s17 = scalar_lea.vmem [#allocation16], %s1847_s27 }
 0x890   : > { %v1289_v25 = vpop.f32.mrf.mxu3  ;;  %s1621_s14 = sshll.u32 %s666_s17, 4  ;;  %s1622_s14 = int_to_ptr.vmem [resolvable:$true] %s1621_s14 }
 0x891   : > { %v1329_v27 = vpop.f32.mrf.mxu1  ;;  %v1350_v38 = vadd.f32 %v1289_v25, %v1250_v36  ;;  %1591 = vmatpush.bf16.msra.mxu2 %v1981_v23  ;;  %v1446_v25 = vperm.slane %v1443_v26, 1 }
 0x895   : > { %v2176_v39 = vpop.eup %2175  ;;  %1592 = vmatpush.bf16.msra.mxu2 %v1980_v24 }
 0x896   : > { %v1358_v41 = vmul.f32 %v2176_v39, %v1350_v38  ;;  %v1977_v38 = vld [vmem:[%s3072_s18 + $0x10] sm:$0xff] }
 0x898   : > { %v1291_v28 = vpop.f32.mrf.mxu3 }
 0x899   : > { %1593 = vmatpush.bf16.msra.mxu2 %v1979_v30 }
 0x89d   : > { %1594 = vmatpush.bf16.msra.mxu2 %v1978_v33 }
 0x8a1   : > { %1595 = vmatpush.bf16.msra.mxu2 %v1977_v38 }
 0x8e0   : > { %v1364_v40 = vpop.permute.xlu2 %1363 }
 0x8e1   : > { %v1374_v42 = vsel %vm778_vm2, %v1358_v41, %v1364_v40  ;;  %v1976_v40 = vld [vmem:[%s3072_s18 + $0x8] sm:$0xff]  ;;  %v1975_v41 = vld [vmem:[%s3072_s18] sm:$0xff] }
 0x8e2   : > { %1596 = vmatpush.bf16.msra.mxu2 %v1976_v40 }
 0x8e6   : > { %1597 = vmatpush.bf16.msra.mxu2 %v1975_v41 }
 0x8fc   : > { %v1372_v44 = vpop.permute.xlu0 %1371 }
 0x900   : > { %v1368_v43 = vpop.permute.xlu1 %1367 }
 0x901   : > { %v1375_v45 = vsel %vm1017_vm7, %v1374_v42, %v1368_v43 }
 0x902   : > { %v1376_v46 = vsel %vm1019_vm8, %v1375_v45, %v1372_v44 }
 0x903   : > { %v1377_v0 = vpack.c.bf16 %v1376_v46, %v1376_v46 }
 0x905   : > { %1904 = vmatmul.msk.bf16.vlgmr.msrb.gmra.mxu3 %vm688_vm0, %v1377_v0 }
 0x988   : > { %v1407_v48 = vpop.f32.mrf.mxu3 }
 0x989   : > { %v1408_v49 = vadd.f32 %v1407_v48, %v1382_v47 }
 0x98b   : > { %v2938_v50 = vadd.f32 %v1408_v49, %v2879_v29  ;;  %v1974_v29 = vld [vmem:[#allocation14 + $0x14] sm:$0xf0] }
 0x98c   : > { %v1916_v1 = vor.u32 %v1974_v29, %v1915_v60 }
 0x98d   : > { %v1412_v51 = vsel %vm688_vm0, %v2938_v50, 0.0 }
 0x98e   : > { %1413 = vadd.xlane.f32.xlu0 %v1412_v51  ;;  %1478 = vmatpush.bf16.msrb.mxu0 %v1916_v1 }
 0x990   : > { %v1409_v52 = vpop.f32.mrf.mxu3 }
 0x992   : > { %1479 = vmatpush.bf16.msrb.mxu0 %v1908_v5 }
 0xa01   : > { %v1414_v53 = vpop.xlane.xlu0 %1413 }
 0xa02   : > { %v1415_v54 = vmul.f32 %v1414_v53, %v2811_v8 }
 0xa04   : > { %v1416_v55 = vsub.f32 %v2938_v50, %v1415_v54 }
 0xa06   : > { %v1417_v56 = vmul.f32 %v1416_v55, %v1416_v55 }
 0xa08   : > { %v1418_v57 = vsel %vm688_vm0, %v1417_v56, 0.0 }
 0xa09   : > { %1419 = vadd.xlane.f32.xlu2 %v1418_v57 }
 0xa7c   : > { %v1420_v6 = vpop.xlane.xlu2 %1419 }
 0xa7d   : > { %v1421_v7 = vmul.f32 %v1420_v6, %v2811_v8 }
 0xa7f   : > { %v1422_v9 = vadd.f32 1e-05, %v1421_v7 }
 0xa81   : > { %2177 = vrsqrt.f32 %v1422_v9  ;;  %vm1429_vm13 = vweird.f32 %v1422_v9 }
 0xa87   : > { %v2178_v10 = vpop.eup %2177 }
 0xa88   : > { %v1424_v11 = vmul.f32 %v2178_v10, %v1422_v9  ;;  %vm1430_vm12 = vweird.f32 %v2178_v10 }
 0xa89   : > { %vm1431_vm14 = vmor %vm1429_vm13, %vm1430_vm12 }
 0xa8a   : > { %v1425_v12 = vmul.f32 %v2178_v10, %v1424_v11 }
 0xa8c   : > { %v1426_v13 = vmul.f32 0.5, %v1425_v12 }
 0xa8e   : > { %v1427_v14 = vsub.f32 1.5, %v1426_v13 }
 0xa90   : > { %v1428_v15 = vmul.f32 %v2178_v10, %v1427_v14 }
 0xa92   : > { %v1432_v17 = vsel %vm1431_vm14, %v2178_v10, %v1428_v15 }
 0xa93   : > { %v1433_v18 = vmul.f32 %v1432_v17, %v1416_v55 }
 0xa95   : > { %v1435_v20 = vmul.f32 %v1434_v16, %v1433_v18 }
 0xa97   : > { %v1437_v21 = vadd.f32 %v1436_v19, %v1435_v20 }
 0xa99   : > { %v1438_v8 = vpack.c.bf16 %v1437_v21, %v1437_v21 }
 0xa9b   : > { %1921 = vmatmul.msk.bf16.vlgmr.msrb.gmra.mxu0 %vm688_vm0, %v1438_v8  ;;  %1922 = vmatmul.msk.bf16.vlgmr.msrb.gmra.mxu1 %vm688_vm0, %v1438_v8 }
 0xb18   : > { %v1481_v27 = vpop.f32.mrf.mxu0  ;;  %v1494_v28 = vpop.f32.mrf.mxu1 }
 0xb19   : > { %v1495_v31 = vadd.f32 %v1494_v28, %v1446_v25  ;;  %v1482_v62 = vadd.f32 %v1481_v27, %v1445_v59 }
 0xb1b   : > { %v1498_v32 = vmul.f32 0.70710677, %v1495_v31  ;;  %v1521_v61 = vmul.f32 0.5, %v1495_v31 }
 0xb1d   : > { %v1499_v34 = vand.u32 2147483647, %v1498_v32  ;;  %vm1518_vm15 = vcmp.ge.f32.partialorder %v1498_v32, 0.0 }
 0xb1f   : > { %v1500_v35 = vmul.f32 0.3275911, %v1499_v34  ;;  %v1512_v43 = vsub.f32 0.0, %v1499_v34 }
 0xb20   : > { %v1483_v36 = vpop.f32.mrf.mxu0  ;;  %v1496_v37 = vpop.f32.mrf.mxu1 }
 0xb21   : > { %v1501_v39 = vadd.f32 1.0, %v1500_v35  ;;  %v1513_v46 = vmul.f32 %v1512_v43, %v1499_v34 }
 0xb23   : > { %2179 = vrcp.f32 %v1501_v39  ;;  %v1514_v48 = vmul.f32 1.442695, %v1513_v46 }
 0xb25   : > { %2181 = vpow2.f32 %v1514_v48 }
 0xb29   : > { %v2180_v42 = vpop.eup %2179 }
 0xb2a   : > { %v1503_v44 = vmul.f32 1.0614054, %v2180_v42 }
 0xb2b   : > { %v2182_v55 = vpop.eup %2181 }
 0xb2c   : > { %v1504_v45 = vadd.f32 -1.4531521, %v1503_v44 }
 0xb2e   : > { %v1505_v0 = vmul.f32 %v2180_v42, %v1504_v45 }
 0xb30   : > { %v1506_v47 = vadd.f32 1.4214138, %v1505_v0 }
 0xb32   : > { %v1507_v49 = vmul.f32 %v2180_v42, %v1506_v47 }
 0xb34   : > { %v1508_v51 = vadd.f32 -0.28449672, %v1507_v49 }
 0xb36   : > { %v1509_v52 = vmul.f32 %v2180_v42, %v1508_v51 }
 0xb38   : > { %v1510_v53 = vadd.f32 0.2548296, %v1509_v52 }
 0xb3a   : > { %v1511_v54 = vmul.f32 %v2180_v42, %v1510_v53 }
 0xb3c   : > { %v1516_v56 = vmul.f32 %v2182_v55, %v1511_v54 }
 0xb3e   : > { %v1517_v57 = vsub.f32 1.0, %v1516_v56 }
 0xb40   : > { %v1519_v58 = vsub.f32 0.0, %v1517_v57 }
 0xb42   : > { %v1520_v60 = vsel %vm1518_vm15, %v1517_v57, %v1519_v58 }
 0xb43   : > { %v1522_v29 = vadd.f32 1.0, %v1520_v60 }
 0xb45   : > { %v1523_v63 = vmul.f32 %v1522_v29, %v1521_v61 }
 0xb47   : > { %v1524_v1 = vmul.f32 %v1523_v63, %v1482_v62 }
 0xb49   : > { %v1525_v2 = vpack.c.bf16 %v1524_v1, %v1524_v1 }
 0xb4b   : > { %1598 = vmatmul.bf16.vlgmr.msra.gmra.mxu2 %v1525_v2 }
 0xbce   : > { %v1599_v4 = vpop.f32.mrf.mxu2 }
 0xbcf   : > { %v1603_v5 = vadd.f32 %v1599_v4, %v2938_v50 }
 0xbd1   : > { %v1605_v6 = vadd.f32 %v2122_v3, %v1603_v5 }
 0xbd3   : > { %1606 = vst.msk [vmem:[%s666_s17] sm:$0xff] %vm688_vm0, %v1605_v6 }
 0xbd4   : > { %2450 = shalt.err (!%p2447_p0)
}
 0xbd5   : > { %2011 = dma.vmem_to_hbm [thread:$0]  (%p2734_p2), %s1622_s14, 128, %s1624_s20, %s1608_s5  }
 0xbd6   : > { %v1601_v50 = vpop.f32.mrf.mxu2 }
 0xbd7 PF: > { %s1635_s7 = sand.u32 1, %s2505_s25   ;;  %p2040_p4 = pnand %p1831_p6, %p2741_p5 }
 0xbd8   : > { %s1636_s9 = scalar_lea.sflag [#allocation4], %s1635_s7 }
 0xbd9   : > { %p2041_p7 = pneg %p2040_p4 }
 0xbdb   : > { %2500 = dma.done.wait (%p2041_p7), %s1636_s9, 128  }
 0xbdc   : > { %2502 = vsyncadd (%p2041_p7), %s1636_s9, 4294967168  ;;  %s35_s30 = sadd.s32 1, %s2525_s30   ;;  %s3076_s12 = sld [smem:[#allocation24_spill]] }
 0xbdd   : > { %p32_p8 = scmp.ge.s32.totalorder %s35_s30, 4   ;;  %s3077_s27 = sld [smem:[#allocation27_spill]] }
 0xbde   : > { %s3078_s28 = sld [smem:[#allocation25_spill]]  ;;  %s3080_s25 = smov %s2509_s26 }
 0xbdf   : > { %s3079_s29 = sld [smem:[#allocation26_spill]]  ;;  %34 = sbr.rel (!%p32_p8) target bundleno = 22 (0x16), region = 163 }
 0xbe2   : > { %s3081_s26 = smov %s3076_s12 }
 0xbe4   :  { %1642 = vsyncpa [#allocation3], 1 }
 0xbe5   :  { %1644 = vsyncpa [#allocation3 + $0x1], 1 }
 0xbe6   :  { %1645 = vsyncpa [#allocation6], 1 }
 0xbe7   :  { %1647 = vsyncpa [#allocation6 + $0x1], 1 }
 0xbe8   :  { %1648 = vsyncpa [#allocation9], 1 }
 0xbe9   :  { %1649 = vsyncpa [#allocation12], 1 }
 0xbea   :  { %1650 = vsyncpa [#allocation15], 1 }
 0xbeb   :  { %1651 = vsyncpa [#allocation4], 1 }
 0xbec   :  { %1653 = vsyncpa [#allocation4 + $0x1], 1 }

</bundles_post_ra>
